<compile_context>
chip_gen: v5e
topology: v5e:2x2
jax: 0.10.0
libtpu: 0.0.40
codegen_flags: <defaults>
</compile_context>

<pallas_src>
import math

import jax
import jax.numpy as jnp
from jax.experimental import pallas as pl
from jax.experimental.pallas import tpu as pltpu


def lstm_classifier_kernel(xcat_ref, rel_ref,
                           w0_ref, b0_ref, whh0_ref,
                           w1_ref, b1_ref, whh1_ref,
                           fcwh_ref, fcwr_ref, fcb_ref,
                           out_ref,
                           seq_ref):
    SB = xcat_ref.shape[0]
    B = rel_ref.shape[0]
    S = SB // B
    H = whh1_ref.shape[0]            # layer-1 Whh is (H, 4H)

    # ---- hoisted layer-0 input projection (fwd+bwd in one matmul; the
    #      backward-direction time flip is baked into xcat; bias folded) ------
    xg0 = (jnp.dot(xcat_ref[...], w0_ref[...],
                   preferred_element_type=jnp.float32)
           + b0_ref[...])                                  # (S*B, 8H) f32

    whh0 = whh0_ref[...]             # (2H, 8H) bf16, block-diagonal, permuted
    whh1 = whh1_ref[...]             # (H, 4H)  bf16, cols [i f o g]

    # fused states: [fwd | bwd] along lanes
    h01 = jnp.zeros((B, 2 * H), jnp.bfloat16)              # matmul operand
    c0 = jnp.zeros((B, 2 * H), jnp.float32)

    # ---- layer 0: one fused (fwd t=k, bwd t=S-1-k) MXU push per step --------
    for k in range(S):
        gates = xg0[k * B:(k + 1) * B, :] + jnp.dot(
            h01, whh0, preferred_element_type=jnp.float32)  # (B, 8H) f32
        # permuted layout: [i_f i_b | f_f f_b | o_f o_b | g_f g_b]
        act = jax.nn.sigmoid(gates[:, :6 * H])              # one batched sigmoid
        g = jnp.tanh(gates[:, 6 * H:])                      # one batched tanh
        i = act[:, 0:2 * H]
        f = act[:, 2 * H:4 * H]
        o = act[:, 4 * H:6 * H]
        c0 = f * c0 + i * g                                 # 32-lane chunks
        h01 = (o * jnp.tanh(c0)).astype(jnp.bfloat16)       # cast once per step
        # column-partitioned sequence scratch: fwd half -> time k,
        # bwd half -> time S-1-k (static row offsets; loop is unrolled).
        seq_ref[k * B:(k + 1) * B, :H] = h01[:, :H].astype(jnp.float32)
        seq_ref[(S - 1 - k) * B:(S - k) * B, H:] = h01[:, H:].astype(jnp.float32)

    # ---- hoisted layer-1 input projection: ONE (S*B,2H)@(2H,4H) matmul ------
    seq_bf = seq_ref[...].astype(jnp.bfloat16)
    xg1 = (jnp.dot(seq_bf, w1_ref[...], preferred_element_type=jnp.float32)
           + b1_ref[...])                                   # (S*B, 4H) f32

    # ---- layer 1, backward direction only (this is ht[-1]); cols [i f o g] --
    h1 = jnp.zeros((B, H), jnp.bfloat16)
    c1 = jnp.zeros((B, H), jnp.float32)
    for k in range(S):
        t = S - 1 - k
        gates = xg1[t * B:(t + 1) * B, :] + jnp.dot(
            h1, whh1, preferred_element_type=jnp.float32)   # (B, 4H) f32
        act = jax.nn.sigmoid(gates[:, :3 * H])              # batched i,f,o
        g = jnp.tanh(gates[:, 3 * H:])
        i = act[:, 0:H]
        f = act[:, H:2 * H]
        o = act[:, 2 * H:3 * H]
        c1 = f * c1 + i * g
        h1 = (o * jnp.tanh(c1)).astype(jnp.bfloat16)        # final after t == 0

    # ---- classifier head: split-weight fc1 (no lane concat) -----------------
    out_ref[...] = (jnp.dot(h1, fcwh_ref[...], preferred_element_type=jnp.float32)
                    + jnp.dot(rel_ref[...], fcwr_ref[...],
                              preferred_element_type=jnp.float32)
                    + fcb_ref[...])


def lstm_classifier_forward(input_ids, params, config):
    E = config['embed_dim']
    H = E // 2
    C = config['num_classes']
    bf16 = jnp.bfloat16
    assert config['aug'] == 1  # TODO(synk): aug=0 path (fc1 on ht[-1] only) not wired here.

    # ---- XLA glue: embedding gathers; dropout = identity at inference -------
    word = params['pretrained'][input_ids].astype(jnp.float32)   # (B, S, E)
    rel = params['related'][input_ids].astype(jnp.float32)       # (B, S, R)
    B, S, _ = word.shape

    word = jnp.transpose(word, (1, 0, 2))                        # (S, B, E)
    # Bake the backward-direction time flip into the layer-0 matmul operand:
    # xcat[k] = [word[k] | word[S-1-k]]   -> (S*B, 2E) bf16 (fuses with gather)
    xcat = jnp.concatenate([word, jnp.flip(word, axis=0)], axis=-1)
    xcat = xcat.reshape(S * B, 2 * E).astype(bf16)

    # relatedness mean over the sequence dim, computed in the wrapper
    rel_mean = jnp.mean(rel, axis=1).astype(bf16)                # (B, R)

    # ---- one-time host-side weight layout work -------------------------------
    def perm_ifog(w):
        """[i,f,g,o] gate blocks (width H, last axis) -> [i,f,o,g]."""
        return jnp.concatenate(
            [w[..., 0:H], w[..., H:2 * H], w[..., 3 * H:4 * H], w[..., 2 * H:3 * H]],
            axis=-1)

    def fuse_dirs(wf, wb):
        """Per-direction [i,f,g,o] blocks -> fused [i_f i_b f_f f_b o_f o_b g_f g_b]."""
        rf = perm_ifog(wf)       # [i_f, f_f, o_f, g_f]
        rb = perm_ifog(wb)       # [i_b, f_b, o_b, g_b]
        pieces = []
        for gi in range(4):
            pieces.append(rf[..., gi * H:(gi + 1) * H])
            pieces.append(rb[..., gi * H:(gi + 1) * H])
        return jnp.concatenate(pieces, axis=-1)

    zE = jnp.zeros_like(params['l0f_wih_t'])                     # (E, 4H)
    zH = jnp.zeros_like(params['l0f_whh_t'])                     # (H, 4H)

    # layer-0 fused input weights: rows 0:E act on word[k] (fwd),
    # rows E:2E act on word[S-1-k] (bwd); columns permuted as above.
    w0 = jnp.concatenate([fuse_dirs(params['l0f_wih_t'], zE),
                          fuse_dirs(zE, params['l0b_wih_t'])],
                         axis=0).astype(bf16)                    # (2E, 8H)
    b0 = fuse_dirs(params['l0f_b'], params['l0b_b'])             # (1, 8H) f32
    # block-diagonal fused recurrent weight: rows 0:H = h_f, rows H:2H = h_b
    whh0 = jnp.concatenate([fuse_dirs(params['l0f_whh_t'], zH),
                            fuse_dirs(zH, params['l0b_whh_t'])],
                           axis=0).astype(bf16)                  # (2H, 8H)

    w1 = perm_ifog(params['l1b_wih_t']).astype(bf16)             # (2H, 4H)
    b1 = perm_ifog(params['l1b_b'])                              # (1, 4H) f32
    whh1 = perm_ifog(params['l1b_whh_t']).astype(bf16)           # (H, 4H)

    fc_w_h = params['fc_w_t'][:H, :].astype(bf16)                # (H, C)
    fc_w_r = params['fc_w_t'][H:, :].astype(bf16)                # (R, C)
    fc_b = params['fc_b']                                        # (1, C) f32

    vmem = pl.BlockSpec(memory_space=pltpu.MemorySpace.VMEM)
    args = (xcat, rel_mean, w0, b0, whh0, w1, b1, whh1, fc_w_h, fc_w_r, fc_b)

    return pl.pallas_call(
        lstm_classifier_kernel,
        out_shape=jax.ShapeDtypeStruct((B, C), jnp.float32),
        in_specs=[vmem] * len(args),
        out_specs=vmem,
        scratch_shapes=[pltpu.VMEM((S * B, 2 * H), jnp.float32)],  # layer-0 seq
    )(*args)


def init_params(key, config, vocab_size):
    """Deterministic synthetic parameters matching the PyTorch module shapes."""
    E = config['embed_dim']
    H = E // 2
    C = config['num_classes']
    R = len(config['keywords'])
    keys = jax.random.split(key, 20)
    kstd = 1.0 / math.sqrt(H)

    def u(k_, shape):
        return jax.random.uniform(k_, shape, jnp.float32, -kstd, kstd)

    def lstm_dir(k1, k2, k3, k4, in_size):
        wih = u(k1, (4 * H, in_size))      # PyTorch: weight_ih (4H, in)
        whh = u(k2, (4 * H, H))            # PyTorch: weight_hh (4H, H)
        bih = u(k3, (4 * H,))
        bhh = u(k4, (4 * H,))
        return wih.T, whh.T, (bih + bhh).reshape(1, 4 * H)

    params = {
        'pretrained': jax.random.normal(keys[0], (vocab_size, E), jnp.float32),
        'related': jax.random.normal(keys[1], (vocab_size, R), jnp.float32),
    }
    params['l0f_wih_t'], params['l0f_whh_t'], params['l0f_b'] = lstm_dir(
        keys[2], keys[3], keys[4], keys[5], E)
    params['l0b_wih_t'], params['l0b_whh_t'], params['l0b_b'] = lstm_dir(
        keys[6], keys[7], keys[8], keys[9], E)
    params['l1b_wih_t'], params['l1b_whh_t'], params['l1b_b'] = lstm_dir(
        keys[10], keys[11], keys[12], keys[13], 2 * H)

    fc_in = H + R * config['aug']
    kf = 1.0 / math.sqrt(fc_in)
    params['fc_w_t'] = jax.random.uniform(keys[14], (C, fc_in), jnp.float32, -kf, kf).T
    params['fc_b'] = jax.random.uniform(keys[15], (1, C), jnp.float32, -kf, kf)
    return params


if __name__ == "__main__":
    config = {
        'embed_dim': 32,
        'num_classes': 4,
        'keywords': ['k0', 'k1', 'k2', 'k3', 'k4'],   # R = 5
        'aug': 1,
        'embed_dropout_prob': 0.1,
    }
    vocab_size = 50
    B, S = 2, 8

    key = jax.random.PRNGKey(0)
    pkey, ikey = jax.random.split(key)
    params = init_params(pkey, config, vocab_size)
    input_ids = jax.random.randint(ikey, (B, S), 0, vocab_size, dtype=jnp.int32)

    logits = lstm_classifier_forward(input_ids, params, config)
    logits = jax.block_until_ready(logits)
    assert logits.shape == (B, config['num_classes'])
    assert logits.dtype == jnp.float32
    print("KERNEL_OK")
</pallas_src>

<mosaic_0001>
module attributes {stable_mosaic.version = 11 : i64} {
  func.func @lstm_classifier_kernel(%arg0: memref<16x64xbf16, #tpu.memory_space<vmem>>, %arg1: memref<2x5xbf16, #tpu.memory_space<vmem>>, %arg2: memref<64x128xbf16, #tpu.memory_space<vmem>>, %arg3: memref<1x128xf32, #tpu.memory_space<vmem>>, %arg4: memref<32x128xbf16, #tpu.memory_space<vmem>>, %arg5: memref<32x64xbf16, #tpu.memory_space<vmem>>, %arg6: memref<1x64xf32, #tpu.memory_space<vmem>>, %arg7: memref<16x64xbf16, #tpu.memory_space<vmem>>, %arg8: memref<16x4xbf16, #tpu.memory_space<vmem>>, %arg9: memref<5x4xbf16, #tpu.memory_space<vmem>>, %arg10: memref<1x4xf32, #tpu.memory_space<vmem>>, %arg11: memref<2x4xf32, #tpu.memory_space<vmem>>, %arg12: memref<16x32xf32, #tpu.memory_space<vmem>>) attributes {dimension_semantics = [], scalar_prefetch = 0 : i64, scratch_operands = 1 : i64, tpu.core_type = #tpu.core_type<tc>} {
    %c0 = arith.constant 0 : index
    %c0_0 = arith.constant 0 : index
    %0 = vector.load %arg0[%c0, %c0_0] : memref<16x64xbf16, #tpu.memory_space<vmem>>, vector<16x64xbf16>
    %c0_1 = arith.constant 0 : index
    %c0_2 = arith.constant 0 : index
    %1 = vector.load %arg2[%c0_1, %c0_2] : memref<64x128xbf16, #tpu.memory_space<vmem>>, vector<64x128xbf16>
    %cst = arith.constant dense<0.000000e+00> : vector<16x128xf32>
    %2 = tpu.matmul %0, %1, %cst {dimension_numbers = #tpu.dot_dimension_numbers<[1], [0], [0], [1], [0, 0, 1, 1], [], []>} : vector<16x64xbf16>, vector<64x128xbf16>, vector<16x128xf32> -> vector<16x128xf32>
    %c0_3 = arith.constant 0 : index
    %c0_4 = arith.constant 0 : index
    %3 = vector.load %arg3[%c0_3, %c0_4] : memref<1x128xf32, #tpu.memory_space<vmem>>, vector<1x128xf32>
    %4 = vector.broadcast %3 : vector<1x128xf32> to vector<16x128xf32>
    %5 = arith.addf %2, %4 : vector<16x128xf32>
    %c0_5 = arith.constant 0 : index
    %c0_6 = arith.constant 0 : index
    %6 = vector.load %arg4[%c0_5, %c0_6] : memref<32x128xbf16, #tpu.memory_space<vmem>>, vector<32x128xbf16>
    %c0_7 = arith.constant 0 : index
    %c0_8 = arith.constant 0 : index
    %7 = vector.load %arg7[%c0_7, %c0_8] : memref<16x64xbf16, #tpu.memory_space<vmem>>, vector<16x64xbf16>
    %cst_9 = arith.constant 0.000000e+00 : bf16
    %8 = vector.broadcast %cst_9 : bf16 to vector<2x32xbf16>
    %cst_10 = arith.constant 0.000000e+00 : f32
    %9 = vector.broadcast %cst_10 : f32 to vector<2x32xf32>
    %10 = vector.extract_strided_slice %5 {offsets = [0, 0], sizes = [2, 128], strides = [1, 1]} : vector<16x128xf32> to vector<2x128xf32>
    %cst_11 = arith.constant dense<0.000000e+00> : vector<2x128xf32>
    %11 = tpu.matmul %8, %6, %cst_11 {dimension_numbers = #tpu.dot_dimension_numbers<[1], [0], [0], [1], [0, 0, 1, 1], [], []>} : vector<2x32xbf16>, vector<32x128xbf16>, vector<2x128xf32> -> vector<2x128xf32>
    %12 = arith.addf %10, %11 : vector<2x128xf32>
    %13 = vector.extract_strided_slice %12 {offsets = [0, 0], sizes = [2, 96], strides = [1, 1]} : vector<2x128xf32> to vector<2x96xf32>
    %14 = arith.negf %13 : vector<2x96xf32>
    %15 = math.exp %14 : vector<2x96xf32>
    %cst_12 = arith.constant 1.000000e+00 : f32
    %16 = vector.broadcast %cst_12 : f32 to vector<2x96xf32>
    %17 = arith.addf %16, %15 : vector<2x96xf32>
    %18 = arith.divf %16, %17 : vector<2x96xf32>
    %19 = vector.extract_strided_slice %12 {offsets = [0, 96], sizes = [2, 32], strides = [1, 1]} : vector<2x128xf32> to vector<2x32xf32>
    %20 = math.tanh %19 : vector<2x32xf32>
    %21 = vector.extract_strided_slice %18 {offsets = [0, 0], sizes = [2, 32], strides = [1, 1]} : vector<2x96xf32> to vector<2x32xf32>
    %22 = vector.extract_strided_slice %18 {offsets = [0, 32], sizes = [2, 32], strides = [1, 1]} : vector<2x96xf32> to vector<2x32xf32>
    %23 = vector.extract_strided_slice %18 {offsets = [0, 64], sizes = [2, 32], strides = [1, 1]} : vector<2x96xf32> to vector<2x32xf32>
    %24 = arith.mulf %22, %9 : vector<2x32xf32>
    %25 = arith.mulf %21, %20 : vector<2x32xf32>
    %26 = arith.addf %24, %25 : vector<2x32xf32>
    %27 = math.tanh %26 : vector<2x32xf32>
    %28 = arith.mulf %23, %27 : vector<2x32xf32>
    %29 = arith.truncf %28 : vector<2x32xf32> to vector<2x32xbf16>
    %30 = vector.extract_strided_slice %29 {offsets = [0, 0], sizes = [2, 16], strides = [1, 1]} : vector<2x32xbf16> to vector<2x16xbf16>
    %31 = arith.extf %30 : vector<2x16xbf16> to vector<2x16xf32>
    %c0_13 = arith.constant 0 : index
    %c0_14 = arith.constant 0 : index
    %32 = vector.load %arg12[%c0_13, %c0_14] : memref<16x32xf32, #tpu.memory_space<vmem>>, vector<2x16xf32>
    tpu.vector_store %arg12[%c0_13, %c0_14], %31 {strides = array<i32>} : memref<16x32xf32, #tpu.memory_space<vmem>>, vector<2x16xf32>,
    %33 = vector.extract_strided_slice %29 {offsets = [0, 16], sizes = [2, 16], strides = [1, 1]} : vector<2x32xbf16> to vector<2x16xbf16>
    %34 = arith.extf %33 : vector<2x16xbf16> to vector<2x16xf32>
    %c14 = arith.constant 14 : index
    %c16 = arith.constant 16 : index
    %35 = vector.load %arg12[%c14, %c16] : memref<16x32xf32, #tpu.memory_space<vmem>>, vector<2x16xf32>
    tpu.vector_store %arg12[%c14, %c16], %34 {strides = array<i32>} : memref<16x32xf32, #tpu.memory_space<vmem>>, vector<2x16xf32>,
    %36 = vector.extract_strided_slice %5 {offsets = [2, 0], sizes = [2, 128], strides = [1, 1]} : vector<16x128xf32> to vector<2x128xf32>
    %cst_15 = arith.constant dense<0.000000e+00> : vector<2x128xf32>
    %37 = tpu.matmul %29, %6, %cst_15 {dimension_numbers = #tpu.dot_dimension_numbers<[1], [0], [0], [1], [0, 0, 1, 1], [], []>} : vector<2x32xbf16>, vector<32x128xbf16>, vector<2x128xf32> -> vector<2x128xf32>
    %38 = arith.addf %36, %37 : vector<2x128xf32>
    %39 = vector.extract_strided_slice %38 {offsets = [0, 0], sizes = [2, 96], strides = [1, 1]} : vector<2x128xf32> to vector<2x96xf32>
    %40 = arith.negf %39 : vector<2x96xf32>
    %41 = math.exp %40 : vector<2x96xf32>
    %cst_16 = arith.constant 1.000000e+00 : f32
    %42 = vector.broadcast %cst_16 : f32 to vector<2x96xf32>
    %43 = arith.addf %42, %41 : vector<2x96xf32>
    %44 = arith.divf %42, %43 : vector<2x96xf32>
    %45 = vector.extract_strided_slice %38 {offsets = [0, 96], sizes = [2, 32], strides = [1, 1]} : vector<2x128xf32> to vector<2x32xf32>
    %46 = math.tanh %45 : vector<2x32xf32>
    %47 = vector.extract_strided_slice %44 {offsets = [0, 0], sizes = [2, 32], strides = [1, 1]} : vector<2x96xf32> to vector<2x32xf32>
    %48 = vector.extract_strided_slice %44 {offsets = [0, 32], sizes = [2, 32], strides = [1, 1]} : vector<2x96xf32> to vector<2x32xf32>
    %49 = vector.extract_strided_slice %44 {offsets = [0, 64], sizes = [2, 32], strides = [1, 1]} : vector<2x96xf32> to vector<2x32xf32>
    %50 = arith.mulf %48, %26 : vector<2x32xf32>
    %51 = arith.mulf %47, %46 : vector<2x32xf32>
    %52 = arith.addf %50, %51 : vector<2x32xf32>
    %53 = math.tanh %52 : vector<2x32xf32>
    %54 = arith.mulf %49, %53 : vector<2x32xf32>
    %55 = arith.truncf %54 : vector<2x32xf32> to vector<2x32xbf16>
    %56 = vector.extract_strided_slice %55 {offsets = [0, 0], sizes = [2, 16], strides = [1, 1]} : vector<2x32xbf16> to vector<2x16xbf16>
    %57 = arith.extf %56 : vector<2x16xbf16> to vector<2x16xf32>
    %c2 = arith.constant 2 : index
    %c0_17 = arith.constant 0 : index
    %58 = vector.load %arg12[%c2, %c0_17] : memref<16x32xf32, #tpu.memory_space<vmem>>, vector<2x16xf32>
    tpu.vector_store %arg12[%c2, %c0_17], %57 {strides = array<i32>} : memref<16x32xf32, #tpu.memory_space<vmem>>, vector<2x16xf32>,
    %59 = vector.extract_strided_slice %55 {offsets = [0, 16], sizes = [2, 16], strides = [1, 1]} : vector<2x32xbf16> to vector<2x16xbf16>
    %60 = arith.extf %59 : vector<2x16xbf16> to vector<2x16xf32>
    %c12 = arith.constant 12 : index
    %c16_18 = arith.constant 16 : index
    %61 = vector.load %arg12[%c12, %c16_18] : memref<16x32xf32, #tpu.memory_space<vmem>>, vector<2x16xf32>
    tpu.vector_store %arg12[%c12, %c16_18], %60 {strides = array<i32>} : memref<16x32xf32, #tpu.memory_space<vmem>>, vector<2x16xf32>,
    %62 = vector.extract_strided_slice %5 {offsets = [4, 0], sizes = [2, 128], strides = [1, 1]} : vector<16x128xf32> to vector<2x128xf32>
    %cst_19 = arith.constant dense<0.000000e+00> : vector<2x128xf32>
    %63 = tpu.matmul %55, %6, %cst_19 {dimension_numbers = #tpu.dot_dimension_numbers<[1], [0], [0], [1], [0, 0, 1, 1], [], []>} : vector<2x32xbf16>, vector<32x128xbf16>, vector<2x128xf32> -> vector<2x128xf32>
    %64 = arith.addf %62, %63 : vector<2x128xf32>
    %65 = vector.extract_strided_slice %64 {offsets = [0, 0], sizes = [2, 96], strides = [1, 1]} : vector<2x128xf32> to vector<2x96xf32>
    %66 = arith.negf %65 : vector<2x96xf32>
    %67 = math.exp %66 : vector<2x96xf32>
    %cst_20 = arith.constant 1.000000e+00 : f32
    %68 = vector.broadcast %cst_20 : f32 to vector<2x96xf32>
    %69 = arith.addf %68, %67 : vector<2x96xf32>
    %70 = arith.divf %68, %69 : vector<2x96xf32>
    %71 = vector.extract_strided_slice %64 {offsets = [0, 96], sizes = [2, 32], strides = [1, 1]} : vector<2x128xf32> to vector<2x32xf32>
    %72 = math.tanh %71 : vector<2x32xf32>
    %73 = vector.extract_strided_slice %70 {offsets = [0, 0], sizes = [2, 32], strides = [1, 1]} : vector<2x96xf32> to vector<2x32xf32>
    %74 = vector.extract_strided_slice %70 {offsets = [0, 32], sizes = [2, 32], strides = [1, 1]} : vector<2x96xf32> to vector<2x32xf32>
    %75 = vector.extract_strided_slice %70 {offsets = [0, 64], sizes = [2, 32], strides = [1, 1]} : vector<2x96xf32> to vector<2x32xf32>
    %76 = arith.mulf %74, %52 : vector<2x32xf32>
    %77 = arith.mulf %73, %72 : vector<2x32xf32>
    %78 = arith.addf %76, %77 : vector<2x32xf32>
    %79 = math.tanh %78 : vector<2x32xf32>
    %80 = arith.mulf %75, %79 : vector<2x32xf32>
    %81 = arith.truncf %80 : vector<2x32xf32> to vector<2x32xbf16>
    %82 = vector.extract_strided_slice %81 {offsets = [0, 0], sizes = [2, 16], strides = [1, 1]} : vector<2x32xbf16> to vector<2x16xbf16>
    %83 = arith.extf %82 : vector<2x16xbf16> to vector<2x16xf32>
    %c4 = arith.constant 4 : index
    %c0_21 = arith.constant 0 : index
    %84 = vector.load %arg12[%c4, %c0_21] : memref<16x32xf32, #tpu.memory_space<vmem>>, vector<2x16xf32>
    tpu.vector_store %arg12[%c4, %c0_21], %83 {strides = array<i32>} : memref<16x32xf32, #tpu.memory_space<vmem>>, vector<2x16xf32>,
    %85 = vector.extract_strided_slice %81 {offsets = [0, 16], sizes = [2, 16], strides = [1, 1]} : vector<2x32xbf16> to vector<2x16xbf16>
    %86 = arith.extf %85 : vector<2x16xbf16> to vector<2x16xf32>
    %c10 = arith.constant 10 : index
    %c16_22 = arith.constant 16 : index
    %87 = vector.load %arg12[%c10, %c16_22] : memref<16x32xf32, #tpu.memory_space<vmem>>, vector<2x16xf32>
    tpu.vector_store %arg12[%c10, %c16_22], %86 {strides = array<i32>} : memref<16x32xf32, #tpu.memory_space<vmem>>, vector<2x16xf32>,
    %88 = vector.extract_strided_slice %5 {offsets = [6, 0], sizes = [2, 128], strides = [1, 1]} : vector<16x128xf32> to vector<2x128xf32>
    %cst_23 = arith.constant dense<0.000000e+00> : vector<2x128xf32>
    %89 = tpu.matmul %81, %6, %cst_23 {dimension_numbers = #tpu.dot_dimension_numbers<[1], [0], [0], [1], [0, 0, 1, 1], [], []>} : vector<2x32xbf16>, vector<32x128xbf16>, vector<2x128xf32> -> vector<2x128xf32>
    %90 = arith.addf %88, %89 : vector<2x128xf32>
    %91 = vector.extract_strided_slice %90 {offsets = [0, 0], sizes = [2, 96], strides = [1, 1]} : vector<2x128xf32> to vector<2x96xf32>
    %92 = arith.negf %91 : vector<2x96xf32>
    %93 = math.exp %92 : vector<2x96xf32>
    %cst_24 = arith.constant 1.000000e+00 : f32
    %94 = vector.broadcast %cst_24 : f32 to vector<2x96xf32>
    %95 = arith.addf %94, %93 : vector<2x96xf32>
    %96 = arith.divf %94, %95 : vector<2x96xf32>
    %97 = vector.extract_strided_slice %90 {offsets = [0, 96], sizes = [2, 32], strides = [1, 1]} : vector<2x128xf32> to vector<2x32xf32>
    %98 = math.tanh %97 : vector<2x32xf32>
    %99 = vector.extract_strided_slice %96 {offsets = [0, 0], sizes = [2, 32], strides = [1, 1]} : vector<2x96xf32> to vector<2x32xf32>
    %100 = vector.extract_strided_slice %96 {offsets = [0, 32], sizes = [2, 32], strides = [1, 1]} : vector<2x96xf32> to vector<2x32xf32>
    %101 = vector.extract_strided_slice %96 {offsets = [0, 64], sizes = [2, 32], strides = [1, 1]} : vector<2x96xf32> to vector<2x32xf32>
    %102 = arith.mulf %100, %78 : vector<2x32xf32>
    %103 = arith.mulf %99, %98 : vector<2x32xf32>
    %104 = arith.addf %102, %103 : vector<2x32xf32>
    %105 = math.tanh %104 : vector<2x32xf32>
    %106 = arith.mulf %101, %105 : vector<2x32xf32>
    %107 = arith.truncf %106 : vector<2x32xf32> to vector<2x32xbf16>
    %108 = vector.extract_strided_slice %107 {offsets = [0, 0], sizes = [2, 16], strides = [1, 1]} : vector<2x32xbf16> to vector<2x16xbf16>
    %109 = arith.extf %108 : vector<2x16xbf16> to vector<2x16xf32>
    %c6 = arith.constant 6 : index
    %c0_25 = arith.constant 0 : index
    %110 = vector.load %arg12[%c6, %c0_25] : memref<16x32xf32, #tpu.memory_space<vmem>>, vector<2x16xf32>
    tpu.vector_store %arg12[%c6, %c0_25], %109 {strides = array<i32>} : memref<16x32xf32, #tpu.memory_space<vmem>>, vector<2x16xf32>,
    %111 = vector.extract_strided_slice %107 {offsets = [0, 16], sizes = [2, 16], strides = [1, 1]} : vector<2x32xbf16> to vector<2x16xbf16>
    %112 = arith.extf %111 : vector<2x16xbf16> to vector<2x16xf32>
    %c8 = arith.constant 8 : index
    %c16_26 = arith.constant 16 : index
    %113 = vector.load %arg12[%c8, %c16_26] : memref<16x32xf32, #tpu.memory_space<vmem>>, vector<2x16xf32>
    tpu.vector_store %arg12[%c8, %c16_26], %112 {strides = array<i32>} : memref<16x32xf32, #tpu.memory_space<vmem>>, vector<2x16xf32>,
    %114 = vector.extract_strided_slice %5 {offsets = [8, 0], sizes = [2, 128], strides = [1, 1]} : vector<16x128xf32> to vector<2x128xf32>
    %cst_27 = arith.constant dense<0.000000e+00> : vector<2x128xf32>
    %115 = tpu.matmul %107, %6, %cst_27 {dimension_numbers = #tpu.dot_dimension_numbers<[1], [0], [0], [1], [0, 0, 1, 1], [], []>} : vector<2x32xbf16>, vector<32x128xbf16>, vector<2x128xf32> -> vector<2x128xf32>
    %116 = arith.addf %114, %115 : vector<2x128xf32>
    %117 = vector.extract_strided_slice %116 {offsets = [0, 0], sizes = [2, 96], strides = [1, 1]} : vector<2x128xf32> to vector<2x96xf32>
    %118 = arith.negf %117 : vector<2x96xf32>
    %119 = math.exp %118 : vector<2x96xf32>
    %cst_28 = arith.constant 1.000000e+00 : f32
    %120 = vector.broadcast %cst_28 : f32 to vector<2x96xf32>
    %121 = arith.addf %120, %119 : vector<2x96xf32>
    %122 = arith.divf %120, %121 : vector<2x96xf32>
    %123 = vector.extract_strided_slice %116 {offsets = [0, 96], sizes = [2, 32], strides = [1, 1]} : vector<2x128xf32> to vector<2x32xf32>
    %124 = math.tanh %123 : vector<2x32xf32>
    %125 = vector.extract_strided_slice %122 {offsets = [0, 0], sizes = [2, 32], strides = [1, 1]} : vector<2x96xf32> to vector<2x32xf32>
    %126 = vector.extract_strided_slice %122 {offsets = [0, 32], sizes = [2, 32], strides = [1, 1]} : vector<2x96xf32> to vector<2x32xf32>
    %127 = vector.extract_strided_slice %122 {offsets = [0, 64], sizes = [2, 32], strides = [1, 1]} : vector<2x96xf32> to vector<2x32xf32>
    %128 = arith.mulf %126, %104 : vector<2x32xf32>
    %129 = arith.mulf %125, %124 : vector<2x32xf32>
    %130 = arith.addf %128, %129 : vector<2x32xf32>
    %131 = math.tanh %130 : vector<2x32xf32>
    %132 = arith.mulf %127, %131 : vector<2x32xf32>
    %133 = arith.truncf %132 : vector<2x32xf32> to vector<2x32xbf16>
    %134 = vector.extract_strided_slice %133 {offsets = [0, 0], sizes = [2, 16], strides = [1, 1]} : vector<2x32xbf16> to vector<2x16xbf16>
    %135 = arith.extf %134 : vector<2x16xbf16> to vector<2x16xf32>
    %c8_29 = arith.constant 8 : index
    %c0_30 = arith.constant 0 : index
    %136 = vector.load %arg12[%c8_29, %c0_30] : memref<16x32xf32, #tpu.memory_space<vmem>>, vector<2x16xf32>
    tpu.vector_store %arg12[%c8_29, %c0_30], %135 {strides = array<i32>} : memref<16x32xf32, #tpu.memory_space<vmem>>, vector<2x16xf32>,
    %137 = vector.extract_strided_slice %133 {offsets = [0, 16], sizes = [2, 16], strides = [1, 1]} : vector<2x32xbf16> to vector<2x16xbf16>
    %138 = arith.extf %137 : vector<2x16xbf16> to vector<2x16xf32>
    %c6_31 = arith.constant 6 : index
    %c16_32 = arith.constant 16 : index
    %139 = vector.load %arg12[%c6_31, %c16_32] : memref<16x32xf32, #tpu.memory_space<vmem>>, vector<2x16xf32>
    tpu.vector_store %arg12[%c6_31, %c16_32], %138 {strides = array<i32>} : memref<16x32xf32, #tpu.memory_space<vmem>>, vector<2x16xf32>,
    %140 = vector.extract_strided_slice %5 {offsets = [10, 0], sizes = [2, 128], strides = [1, 1]} : vector<16x128xf32> to vector<2x128xf32>
    %cst_33 = arith.constant dense<0.000000e+00> : vector<2x128xf32>
    %141 = tpu.matmul %133, %6, %cst_33 {dimension_numbers = #tpu.dot_dimension_numbers<[1], [0], [0], [1], [0, 0, 1, 1], [], []>} : vector<2x32xbf16>, vector<32x128xbf16>, vector<2x128xf32> -> vector<2x128xf32>
    %142 = arith.addf %140, %141 : vector<2x128xf32>
    %143 = vector.extract_strided_slice %142 {offsets = [0, 0], sizes = [2, 96], strides = [1, 1]} : vector<2x128xf32> to vector<2x96xf32>
    %144 = arith.negf %143 : vector<2x96xf32>
    %145 = math.exp %144 : vector<2x96xf32>
    %cst_34 = arith.constant 1.000000e+00 : f32
    %146 = vector.broadcast %cst_34 : f32 to vector<2x96xf32>
    %147 = arith.addf %146, %145 : vector<2x96xf32>
    %148 = arith.divf %146, %147 : vector<2x96xf32>
    %149 = vector.extract_strided_slice %142 {offsets = [0, 96], sizes = [2, 32], strides = [1, 1]} : vector<2x128xf32> to vector<2x32xf32>
    %150 = math.tanh %149 : vector<2x32xf32>
    %151 = vector.extract_strided_slice %148 {offsets = [0, 0], sizes = [2, 32], strides = [1, 1]} : vector<2x96xf32> to vector<2x32xf32>
    %152 = vector.extract_strided_slice %148 {offsets = [0, 32], sizes = [2, 32], strides = [1, 1]} : vector<2x96xf32> to vector<2x32xf32>
    %153 = vector.extract_strided_slice %148 {offsets = [0, 64], sizes = [2, 32], strides = [1, 1]} : vector<2x96xf32> to vector<2x32xf32>
    %154 = arith.mulf %152, %130 : vector<2x32xf32>
    %155 = arith.mulf %151, %150 : vector<2x32xf32>
    %156 = arith.addf %154, %155 : vector<2x32xf32>
    %157 = math.tanh %156 : vector<2x32xf32>
    %158 = arith.mulf %153, %157 : vector<2x32xf32>
    %159 = arith.truncf %158 : vector<2x32xf32> to vector<2x32xbf16>
    %160 = vector.extract_strided_slice %159 {offsets = [0, 0], sizes = [2, 16], strides = [1, 1]} : vector<2x32xbf16> to vector<2x16xbf16>
    %161 = arith.extf %160 : vector<2x16xbf16> to vector<2x16xf32>
    %c10_35 = arith.constant 10 : index
    %c0_36 = arith.constant 0 : index
    %162 = vector.load %arg12[%c10_35, %c0_36] : memref<16x32xf32, #tpu.memory_space<vmem>>, vector<2x16xf32>
    tpu.vector_store %arg12[%c10_35, %c0_36], %161 {strides = array<i32>} : memref<16x32xf32, #tpu.memory_space<vmem>>, vector<2x16xf32>,
    %163 = vector.extract_strided_slice %159 {offsets = [0, 16], sizes = [2, 16], strides = [1, 1]} : vector<2x32xbf16> to vector<2x16xbf16>
    %164 = arith.extf %163 : vector<2x16xbf16> to vector<2x16xf32>
    %c4_37 = arith.constant 4 : index
    %c16_38 = arith.constant 16 : index
    %165 = vector.load %arg12[%c4_37, %c16_38] : memref<16x32xf32, #tpu.memory_space<vmem>>, vector<2x16xf32>
    tpu.vector_store %arg12[%c4_37, %c16_38], %164 {strides = array<i32>} : memref<16x32xf32, #tpu.memory_space<vmem>>, vector<2x16xf32>,
    %166 = vector.extract_strided_slice %5 {offsets = [12, 0], sizes = [2, 128], strides = [1, 1]} : vector<16x128xf32> to vector<2x128xf32>
    %cst_39 = arith.constant dense<0.000000e+00> : vector<2x128xf32>
    %167 = tpu.matmul %159, %6, %cst_39 {dimension_numbers = #tpu.dot_dimension_numbers<[1], [0], [0], [1], [0, 0, 1, 1], [], []>} : vector<2x32xbf16>, vector<32x128xbf16>, vector<2x128xf32> -> vector<2x128xf32>
    %168 = arith.addf %166, %167 : vector<2x128xf32>
    %169 = vector.extract_strided_slice %168 {offsets = [0, 0], sizes = [2, 96], strides = [1, 1]} : vector<2x128xf32> to vector<2x96xf32>
    %170 = arith.negf %169 : vector<2x96xf32>
    %171 = math.exp %170 : vector<2x96xf32>
    %cst_40 = arith.constant 1.000000e+00 : f32
    %172 = vector.broadcast %cst_40 : f32 to vector<2x96xf32>
    %173 = arith.addf %172, %171 : vector<2x96xf32>
    %174 = arith.divf %172, %173 : vector<2x96xf32>
    %175 = vector.extract_strided_slice %168 {offsets = [0, 96], sizes = [2, 32], strides = [1, 1]} : vector<2x128xf32> to vector<2x32xf32>
    %176 = math.tanh %175 : vector<2x32xf32>
    %177 = vector.extract_strided_slice %174 {offsets = [0, 0], sizes = [2, 32], strides = [1, 1]} : vector<2x96xf32> to vector<2x32xf32>
    %178 = vector.extract_strided_slice %174 {offsets = [0, 32], sizes = [2, 32], strides = [1, 1]} : vector<2x96xf32> to vector<2x32xf32>
    %179 = vector.extract_strided_slice %174 {offsets = [0, 64], sizes = [2, 32], strides = [1, 1]} : vector<2x96xf32> to vector<2x32xf32>
    %180 = arith.mulf %178, %156 : vector<2x32xf32>
    %181 = arith.mulf %177, %176 : vector<2x32xf32>
    %182 = arith.addf %180, %181 : vector<2x32xf32>
    %183 = math.tanh %182 : vector<2x32xf32>
    %184 = arith.mulf %179, %183 : vector<2x32xf32>
    %185 = arith.truncf %184 : vector<2x32xf32> to vector<2x32xbf16>
    %186 = vector.extract_strided_slice %185 {offsets = [0, 0], sizes = [2, 16], strides = [1, 1]} : vector<2x32xbf16> to vector<2x16xbf16>
    %187 = arith.extf %186 : vector<2x16xbf16> to vector<2x16xf32>
    %c12_41 = arith.constant 12 : index
    %c0_42 = arith.constant 0 : index
    %188 = vector.load %arg12[%c12_41, %c0_42] : memref<16x32xf32, #tpu.memory_space<vmem>>, vector<2x16xf32>
    tpu.vector_store %arg12[%c12_41, %c0_42], %187 {strides = array<i32>} : memref<16x32xf32, #tpu.memory_space<vmem>>, vector<2x16xf32>,
    %189 = vector.extract_strided_slice %185 {offsets = [0, 16], sizes = [2, 16], strides = [1, 1]} : vector<2x32xbf16> to vector<2x16xbf16>
    %190 = arith.extf %189 : vector<2x16xbf16> to vector<2x16xf32>
    %c2_43 = arith.constant 2 : index
    %c16_44 = arith.constant 16 : index
    %191 = vector.load %arg12[%c2_43, %c16_44] : memref<16x32xf32, #tpu.memory_space<vmem>>, vector<2x16xf32>
    tpu.vector_store %arg12[%c2_43, %c16_44], %190 {strides = array<i32>} : memref<16x32xf32, #tpu.memory_space<vmem>>, vector<2x16xf32>,
    %192 = vector.extract_strided_slice %5 {offsets = [14, 0], sizes = [2, 128], strides = [1, 1]} : vector<16x128xf32> to vector<2x128xf32>
    %cst_45 = arith.constant dense<0.000000e+00> : vector<2x128xf32>
    %193 = tpu.matmul %185, %6, %cst_45 {dimension_numbers = #tpu.dot_dimension_numbers<[1], [0], [0], [1], [0, 0, 1, 1], [], []>} : vector<2x32xbf16>, vector<32x128xbf16>, vector<2x128xf32> -> vector<2x128xf32>
    %194 = arith.addf %192, %193 : vector<2x128xf32>
    %195 = vector.extract_strided_slice %194 {offsets = [0, 0], sizes = [2, 96], strides = [1, 1]} : vector<2x128xf32> to vector<2x96xf32>
    %196 = arith.negf %195 : vector<2x96xf32>
    %197 = math.exp %196 : vector<2x96xf32>
    %cst_46 = arith.constant 1.000000e+00 : f32
    %198 = vector.broadcast %cst_46 : f32 to vector<2x96xf32>
    %199 = arith.addf %198, %197 : vector<2x96xf32>
    %200 = arith.divf %198, %199 : vector<2x96xf32>
    %201 = vector.extract_strided_slice %194 {offsets = [0, 96], sizes = [2, 32], strides = [1, 1]} : vector<2x128xf32> to vector<2x32xf32>
    %202 = math.tanh %201 : vector<2x32xf32>
    %203 = vector.extract_strided_slice %200 {offsets = [0, 0], sizes = [2, 32], strides = [1, 1]} : vector<2x96xf32> to vector<2x32xf32>
    %204 = vector.extract_strided_slice %200 {offsets = [0, 32], sizes = [2, 32], strides = [1, 1]} : vector<2x96xf32> to vector<2x32xf32>
    %205 = vector.extract_strided_slice %200 {offsets = [0, 64], sizes = [2, 32], strides = [1, 1]} : vector<2x96xf32> to vector<2x32xf32>
    %206 = arith.mulf %204, %182 : vector<2x32xf32>
    %207 = arith.mulf %203, %202 : vector<2x32xf32>
    %208 = arith.addf %206, %207 : vector<2x32xf32>
    %209 = math.tanh %208 : vector<2x32xf32>
    %210 = arith.mulf %205, %209 : vector<2x32xf32>
    %211 = arith.truncf %210 : vector<2x32xf32> to vector<2x32xbf16>
    %212 = vector.extract_strided_slice %211 {offsets = [0, 0], sizes = [2, 16], strides = [1, 1]} : vector<2x32xbf16> to vector<2x16xbf16>
    %213 = arith.extf %212 : vector<2x16xbf16> to vector<2x16xf32>
    %c14_47 = arith.constant 14 : index
    %c0_48 = arith.constant 0 : index
    %214 = vector.load %arg12[%c14_47, %c0_48] : memref<16x32xf32, #tpu.memory_space<vmem>>, vector<2x16xf32>
    tpu.vector_store %arg12[%c14_47, %c0_48], %213 {strides = array<i32>} : memref<16x32xf32, #tpu.memory_space<vmem>>, vector<2x16xf32>,
    %215 = vector.extract_strided_slice %211 {offsets = [0, 16], sizes = [2, 16], strides = [1, 1]} : vector<2x32xbf16> to vector<2x16xbf16>
    %216 = arith.extf %215 : vector<2x16xbf16> to vector<2x16xf32>
    %c0_49 = arith.constant 0 : index
    %c16_50 = arith.constant 16 : index
    %217 = vector.load %arg12[%c0_49, %c16_50] : memref<16x32xf32, #tpu.memory_space<vmem>>, vector<2x16xf32>
    tpu.vector_store %arg12[%c0_49, %c16_50], %216 {strides = array<i32>} : memref<16x32xf32, #tpu.memory_space<vmem>>, vector<2x16xf32>,
    %c0_51 = arith.constant 0 : index
    %c0_52 = arith.constant 0 : index
    %218 = vector.load %arg12[%c0_51, %c0_52] : memref<16x32xf32, #tpu.memory_space<vmem>>, vector<16x32xf32>
    %219 = arith.truncf %218 : vector<16x32xf32> to vector<16x32xbf16>
    %c0_53 = arith.constant 0 : index
    %c0_54 = arith.constant 0 : index
    %220 = vector.load %arg5[%c0_53, %c0_54] : memref<32x64xbf16, #tpu.memory_space<vmem>>, vector<32x64xbf16>
    %cst_55 = arith.constant dense<0.000000e+00> : vector<16x64xf32>
    %221 = tpu.matmul %219, %220, %cst_55 {dimension_numbers = #tpu.dot_dimension_numbers<[1], [0], [0], [1], [0, 0, 1, 1], [], []>} : vector<16x32xbf16>, vector<32x64xbf16>, vector<16x64xf32> -> vector<16x64xf32>
    %c0_56 = arith.constant 0 : index
    %c0_57 = arith.constant 0 : index
    %222 = vector.load %arg6[%c0_56, %c0_57] : memref<1x64xf32, #tpu.memory_space<vmem>>, vector<1x64xf32>
    %223 = vector.broadcast %222 : vector<1x64xf32> to vector<16x64xf32>
    %224 = arith.addf %221, %223 : vector<16x64xf32>
    %cst_58 = arith.constant 0.000000e+00 : bf16
    %225 = vector.broadcast %cst_58 : bf16 to vector<2x16xbf16>
    %cst_59 = arith.constant 0.000000e+00 : f32
    %226 = vector.broadcast %cst_59 : f32 to vector<2x16xf32>
    %227 = vector.extract_strided_slice %224 {offsets = [14, 0], sizes = [2, 64], strides = [1, 1]} : vector<16x64xf32> to vector<2x64xf32>
    %cst_60 = arith.constant dense<0.000000e+00> : vector<2x64xf32>
    %228 = tpu.matmul %225, %7, %cst_60 {dimension_numbers = #tpu.dot_dimension_numbers<[1], [0], [0], [1], [0, 0, 1, 1], [], []>} : vector<2x16xbf16>, vector<16x64xbf16>, vector<2x64xf32> -> vector<2x64xf32>
    %229 = arith.addf %227, %228 : vector<2x64xf32>
    %230 = vector.extract_strided_slice %229 {offsets = [0, 0], sizes = [2, 48], strides = [1, 1]} : vector<2x64xf32> to vector<2x48xf32>
    %231 = arith.negf %230 : vector<2x48xf32>
    %232 = math.exp %231 : vector<2x48xf32>
    %cst_61 = arith.constant 1.000000e+00 : f32
    %233 = vector.broadcast %cst_61 : f32 to vector<2x48xf32>
    %234 = arith.addf %233, %232 : vector<2x48xf32>
    %235 = arith.divf %233, %234 : vector<2x48xf32>
    %236 = vector.extract_strided_slice %229 {offsets = [0, 48], sizes = [2, 16], strides = [1, 1]} : vector<2x64xf32> to vector<2x16xf32>
    %237 = math.tanh %236 : vector<2x16xf32>
    %238 = vector.extract_strided_slice %235 {offsets = [0, 0], sizes = [2, 16], strides = [1, 1]} : vector<2x48xf32> to vector<2x16xf32>
    %239 = vector.extract_strided_slice %235 {offsets = [0, 16], sizes = [2, 16], strides = [1, 1]} : vector<2x48xf32> to vector<2x16xf32>
    %240 = vector.extract_strided_slice %235 {offsets = [0, 32], sizes = [2, 16], strides = [1, 1]} : vector<2x48xf32> to vector<2x16xf32>
    %241 = arith.mulf %239, %226 : vector<2x16xf32>
    %242 = arith.mulf %238, %237 : vector<2x16xf32>
    %243 = arith.addf %241, %242 : vector<2x16xf32>
    %244 = math.tanh %243 : vector<2x16xf32>
    %245 = arith.mulf %240, %244 : vector<2x16xf32>
    %246 = arith.truncf %245 : vector<2x16xf32> to vector<2x16xbf16>
    %247 = vector.extract_strided_slice %224 {offsets = [12, 0], sizes = [2, 64], strides = [1, 1]} : vector<16x64xf32> to vector<2x64xf32>
    %cst_62 = arith.constant dense<0.000000e+00> : vector<2x64xf32>
    %248 = tpu.matmul %246, %7, %cst_62 {dimension_numbers = #tpu.dot_dimension_numbers<[1], [0], [0], [1], [0, 0, 1, 1], [], []>} : vector<2x16xbf16>, vector<16x64xbf16>, vector<2x64xf32> -> vector<2x64xf32>
    %249 = arith.addf %247, %248 : vector<2x64xf32>
    %250 = vector.extract_strided_slice %249 {offsets = [0, 0], sizes = [2, 48], strides = [1, 1]} : vector<2x64xf32> to vector<2x48xf32>
    %251 = arith.negf %250 : vector<2x48xf32>
    %252 = math.exp %251 : vector<2x48xf32>
    %cst_63 = arith.constant 1.000000e+00 : f32
    %253 = vector.broadcast %cst_63 : f32 to vector<2x48xf32>
    %254 = arith.addf %253, %252 : vector<2x48xf32>
    %255 = arith.divf %253, %254 : vector<2x48xf32>
    %256 = vector.extract_strided_slice %249 {offsets = [0, 48], sizes = [2, 16], strides = [1, 1]} : vector<2x64xf32> to vector<2x16xf32>
    %257 = math.tanh %256 : vector<2x16xf32>
    %258 = vector.extract_strided_slice %255 {offsets = [0, 0], sizes = [2, 16], strides = [1, 1]} : vector<2x48xf32> to vector<2x16xf32>
    %259 = vector.extract_strided_slice %255 {offsets = [0, 16], sizes = [2, 16], strides = [1, 1]} : vector<2x48xf32> to vector<2x16xf32>
    %260 = vector.extract_strided_slice %255 {offsets = [0, 32], sizes = [2, 16], strides = [1, 1]} : vector<2x48xf32> to vector<2x16xf32>
    %261 = arith.mulf %259, %243 : vector<2x16xf32>
    %262 = arith.mulf %258, %257 : vector<2x16xf32>
    %263 = arith.addf %261, %262 : vector<2x16xf32>
    %264 = math.tanh %263 : vector<2x16xf32>
    %265 = arith.mulf %260, %264 : vector<2x16xf32>
    %266 = arith.truncf %265 : vector<2x16xf32> to vector<2x16xbf16>
    %267 = vector.extract_strided_slice %224 {offsets = [10, 0], sizes = [2, 64], strides = [1, 1]} : vector<16x64xf32> to vector<2x64xf32>
    %cst_64 = arith.constant dense<0.000000e+00> : vector<2x64xf32>
    %268 = tpu.matmul %266, %7, %cst_64 {dimension_numbers = #tpu.dot_dimension_numbers<[1], [0], [0], [1], [0, 0, 1, 1], [], []>} : vector<2x16xbf16>, vector<16x64xbf16>, vector<2x64xf32> -> vector<2x64xf32>
    %269 = arith.addf %267, %268 : vector<2x64xf32>
    %270 = vector.extract_strided_slice %269 {offsets = [0, 0], sizes = [2, 48], strides = [1, 1]} : vector<2x64xf32> to vector<2x48xf32>
    %271 = arith.negf %270 : vector<2x48xf32>
    %272 = math.exp %271 : vector<2x48xf32>
    %cst_65 = arith.constant 1.000000e+00 : f32
    %273 = vector.broadcast %cst_65 : f32 to vector<2x48xf32>
    %274 = arith.addf %273, %272 : vector<2x48xf32>
    %275 = arith.divf %273, %274 : vector<2x48xf32>
    %276 = vector.extract_strided_slice %269 {offsets = [0, 48], sizes = [2, 16], strides = [1, 1]} : vector<2x64xf32> to vector<2x16xf32>
    %277 = math.tanh %276 : vector<2x16xf32>
    %278 = vector.extract_strided_slice %275 {offsets = [0, 0], sizes = [2, 16], strides = [1, 1]} : vector<2x48xf32> to vector<2x16xf32>
    %279 = vector.extract_strided_slice %275 {offsets = [0, 16], sizes = [2, 16], strides = [1, 1]} : vector<2x48xf32> to vector<2x16xf32>
    %280 = vector.extract_strided_slice %275 {offsets = [0, 32], sizes = [2, 16], strides = [1, 1]} : vector<2x48xf32> to vector<2x16xf32>
    %281 = arith.mulf %279, %263 : vector<2x16xf32>
    %282 = arith.mulf %278, %277 : vector<2x16xf32>
    %283 = arith.addf %281, %282 : vector<2x16xf32>
    %284 = math.tanh %283 : vector<2x16xf32>
    %285 = arith.mulf %280, %284 : vector<2x16xf32>
    %286 = arith.truncf %285 : vector<2x16xf32> to vector<2x16xbf16>
    %287 = vector.extract_strided_slice %224 {offsets = [8, 0], sizes = [2, 64], strides = [1, 1]} : vector<16x64xf32> to vector<2x64xf32>
    %cst_66 = arith.constant dense<0.000000e+00> : vector<2x64xf32>
    %288 = tpu.matmul %286, %7, %cst_66 {dimension_numbers = #tpu.dot_dimension_numbers<[1], [0], [0], [1], [0, 0, 1, 1], [], []>} : vector<2x16xbf16>, vector<16x64xbf16>, vector<2x64xf32> -> vector<2x64xf32>
    %289 = arith.addf %287, %288 : vector<2x64xf32>
    %290 = vector.extract_strided_slice %289 {offsets = [0, 0], sizes = [2, 48], strides = [1, 1]} : vector<2x64xf32> to vector<2x48xf32>
    %291 = arith.negf %290 : vector<2x48xf32>
    %292 = math.exp %291 : vector<2x48xf32>
    %cst_67 = arith.constant 1.000000e+00 : f32
    %293 = vector.broadcast %cst_67 : f32 to vector<2x48xf32>
    %294 = arith.addf %293, %292 : vector<2x48xf32>
    %295 = arith.divf %293, %294 : vector<2x48xf32>
    %296 = vector.extract_strided_slice %289 {offsets = [0, 48], sizes = [2, 16], strides = [1, 1]} : vector<2x64xf32> to vector<2x16xf32>
    %297 = math.tanh %296 : vector<2x16xf32>
    %298 = vector.extract_strided_slice %295 {offsets = [0, 0], sizes = [2, 16], strides = [1, 1]} : vector<2x48xf32> to vector<2x16xf32>
    %299 = vector.extract_strided_slice %295 {offsets = [0, 16], sizes = [2, 16], strides = [1, 1]} : vector<2x48xf32> to vector<2x16xf32>
    %300 = vector.extract_strided_slice %295 {offsets = [0, 32], sizes = [2, 16], strides = [1, 1]} : vector<2x48xf32> to vector<2x16xf32>
    %301 = arith.mulf %299, %283 : vector<2x16xf32>
    %302 = arith.mulf %298, %297 : vector<2x16xf32>
    %303 = arith.addf %301, %302 : vector<2x16xf32>
    %304 = math.tanh %303 : vector<2x16xf32>
    %305 = arith.mulf %300, %304 : vector<2x16xf32>
    %306 = arith.truncf %305 : vector<2x16xf32> to vector<2x16xbf16>
    %307 = vector.extract_strided_slice %224 {offsets = [6, 0], sizes = [2, 64], strides = [1, 1]} : vector<16x64xf32> to vector<2x64xf32>
    %cst_68 = arith.constant dense<0.000000e+00> : vector<2x64xf32>
    %308 = tpu.matmul %306, %7, %cst_68 {dimension_numbers = #tpu.dot_dimension_numbers<[1], [0], [0], [1], [0, 0, 1, 1], [], []>} : vector<2x16xbf16>, vector<16x64xbf16>, vector<2x64xf32> -> vector<2x64xf32>
    %309 = arith.addf %307, %308 : vector<2x64xf32>
    %310 = vector.extract_strided_slice %309 {offsets = [0, 0], sizes = [2, 48], strides = [1, 1]} : vector<2x64xf32> to vector<2x48xf32>
    %311 = arith.negf %310 : vector<2x48xf32>
    %312 = math.exp %311 : vector<2x48xf32>
    %cst_69 = arith.constant 1.000000e+00 : f32
    %313 = vector.broadcast %cst_69 : f32 to vector<2x48xf32>
    %314 = arith.addf %313, %312 : vector<2x48xf32>
    %315 = arith.divf %313, %314 : vector<2x48xf32>
    %316 = vector.extract_strided_slice %309 {offsets = [0, 48], sizes = [2, 16], strides = [1, 1]} : vector<2x64xf32> to vector<2x16xf32>
    %317 = math.tanh %316 : vector<2x16xf32>
    %318 = vector.extract_strided_slice %315 {offsets = [0, 0], sizes = [2, 16], strides = [1, 1]} : vector<2x48xf32> to vector<2x16xf32>
    %319 = vector.extract_strided_slice %315 {offsets = [0, 16], sizes = [2, 16], strides = [1, 1]} : vector<2x48xf32> to vector<2x16xf32>
    %320 = vector.extract_strided_slice %315 {offsets = [0, 32], sizes = [2, 16], strides = [1, 1]} : vector<2x48xf32> to vector<2x16xf32>
    %321 = arith.mulf %319, %303 : vector<2x16xf32>
    %322 = arith.mulf %318, %317 : vector<2x16xf32>
    %323 = arith.addf %321, %322 : vector<2x16xf32>
    %324 = math.tanh %323 : vector<2x16xf32>
    %325 = arith.mulf %320, %324 : vector<2x16xf32>
    %326 = arith.truncf %325 : vector<2x16xf32> to vector<2x16xbf16>
    %327 = vector.extract_strided_slice %224 {offsets = [4, 0], sizes = [2, 64], strides = [1, 1]} : vector<16x64xf32> to vector<2x64xf32>
    %cst_70 = arith.constant dense<0.000000e+00> : vector<2x64xf32>
    %328 = tpu.matmul %326, %7, %cst_70 {dimension_numbers = #tpu.dot_dimension_numbers<[1], [0], [0], [1], [0, 0, 1, 1], [], []>} : vector<2x16xbf16>, vector<16x64xbf16>, vector<2x64xf32> -> vector<2x64xf32>
    %329 = arith.addf %327, %328 : vector<2x64xf32>
    %330 = vector.extract_strided_slice %329 {offsets = [0, 0], sizes = [2, 48], strides = [1, 1]} : vector<2x64xf32> to vector<2x48xf32>
    %331 = arith.negf %330 : vector<2x48xf32>
    %332 = math.exp %331 : vector<2x48xf32>
    %cst_71 = arith.constant 1.000000e+00 : f32
    %333 = vector.broadcast %cst_71 : f32 to vector<2x48xf32>
    %334 = arith.addf %333, %332 : vector<2x48xf32>
    %335 = arith.divf %333, %334 : vector<2x48xf32>
    %336 = vector.extract_strided_slice %329 {offsets = [0, 48], sizes = [2, 16], strides = [1, 1]} : vector<2x64xf32> to vector<2x16xf32>
    %337 = math.tanh %336 : vector<2x16xf32>
    %338 = vector.extract_strided_slice %335 {offsets = [0, 0], sizes = [2, 16], strides = [1, 1]} : vector<2x48xf32> to vector<2x16xf32>
    %339 = vector.extract_strided_slice %335 {offsets = [0, 16], sizes = [2, 16], strides = [1, 1]} : vector<2x48xf32> to vector<2x16xf32>
    %340 = vector.extract_strided_slice %335 {offsets = [0, 32], sizes = [2, 16], strides = [1, 1]} : vector<2x48xf32> to vector<2x16xf32>
    %341 = arith.mulf %339, %323 : vector<2x16xf32>
    %342 = arith.mulf %338, %337 : vector<2x16xf32>
    %343 = arith.addf %341, %342 : vector<2x16xf32>
    %344 = math.tanh %343 : vector<2x16xf32>
    %345 = arith.mulf %340, %344 : vector<2x16xf32>
    %346 = arith.truncf %345 : vector<2x16xf32> to vector<2x16xbf16>
    %347 = vector.extract_strided_slice %224 {offsets = [2, 0], sizes = [2, 64], strides = [1, 1]} : vector<16x64xf32> to vector<2x64xf32>
    %cst_72 = arith.constant dense<0.000000e+00> : vector<2x64xf32>
    %348 = tpu.matmul %346, %7, %cst_72 {dimension_numbers = #tpu.dot_dimension_numbers<[1], [0], [0], [1], [0, 0, 1, 1], [], []>} : vector<2x16xbf16>, vector<16x64xbf16>, vector<2x64xf32> -> vector<2x64xf32>
    %349 = arith.addf %347, %348 : vector<2x64xf32>
    %350 = vector.extract_strided_slice %349 {offsets = [0, 0], sizes = [2, 48], strides = [1, 1]} : vector<2x64xf32> to vector<2x48xf32>
    %351 = arith.negf %350 : vector<2x48xf32>
    %352 = math.exp %351 : vector<2x48xf32>
    %cst_73 = arith.constant 1.000000e+00 : f32
    %353 = vector.broadcast %cst_73 : f32 to vector<2x48xf32>
    %354 = arith.addf %353, %352 : vector<2x48xf32>
    %355 = arith.divf %353, %354 : vector<2x48xf32>
    %356 = vector.extract_strided_slice %349 {offsets = [0, 48], sizes = [2, 16], strides = [1, 1]} : vector<2x64xf32> to vector<2x16xf32>
    %357 = math.tanh %356 : vector<2x16xf32>
    %358 = vector.extract_strided_slice %355 {offsets = [0, 0], sizes = [2, 16], strides = [1, 1]} : vector<2x48xf32> to vector<2x16xf32>
    %359 = vector.extract_strided_slice %355 {offsets = [0, 16], sizes = [2, 16], strides = [1, 1]} : vector<2x48xf32> to vector<2x16xf32>
    %360 = vector.extract_strided_slice %355 {offsets = [0, 32], sizes = [2, 16], strides = [1, 1]} : vector<2x48xf32> to vector<2x16xf32>
    %361 = arith.mulf %359, %343 : vector<2x16xf32>
    %362 = arith.mulf %358, %357 : vector<2x16xf32>
    %363 = arith.addf %361, %362 : vector<2x16xf32>
    %364 = math.tanh %363 : vector<2x16xf32>
    %365 = arith.mulf %360, %364 : vector<2x16xf32>
    %366 = arith.truncf %365 : vector<2x16xf32> to vector<2x16xbf16>
    %367 = vector.extract_strided_slice %224 {offsets = [0, 0], sizes = [2, 64], strides = [1, 1]} : vector<16x64xf32> to vector<2x64xf32>
    %cst_74 = arith.constant dense<0.000000e+00> : vector<2x64xf32>
    %368 = tpu.matmul %366, %7, %cst_74 {dimension_numbers = #tpu.dot_dimension_numbers<[1], [0], [0], [1], [0, 0, 1, 1], [], []>} : vector<2x16xbf16>, vector<16x64xbf16>, vector<2x64xf32> -> vector<2x64xf32>
    %369 = arith.addf %367, %368 : vector<2x64xf32>
    %370 = vector.extract_strided_slice %369 {offsets = [0, 0], sizes = [2, 48], strides = [1, 1]} : vector<2x64xf32> to vector<2x48xf32>
    %371 = arith.negf %370 : vector<2x48xf32>
    %372 = math.exp %371 : vector<2x48xf32>
    %cst_75 = arith.constant 1.000000e+00 : f32
    %373 = vector.broadcast %cst_75 : f32 to vector<2x48xf32>
    %374 = arith.addf %373, %372 : vector<2x48xf32>
    %375 = arith.divf %373, %374 : vector<2x48xf32>
    %376 = vector.extract_strided_slice %369 {offsets = [0, 48], sizes = [2, 16], strides = [1, 1]} : vector<2x64xf32> to vector<2x16xf32>
    %377 = math.tanh %376 : vector<2x16xf32>
    %378 = vector.extract_strided_slice %375 {offsets = [0, 0], sizes = [2, 16], strides = [1, 1]} : vector<2x48xf32> to vector<2x16xf32>
    %379 = vector.extract_strided_slice %375 {offsets = [0, 16], sizes = [2, 16], strides = [1, 1]} : vector<2x48xf32> to vector<2x16xf32>
    %380 = vector.extract_strided_slice %375 {offsets = [0, 32], sizes = [2, 16], strides = [1, 1]} : vector<2x48xf32> to vector<2x16xf32>
    %381 = arith.mulf %379, %363 : vector<2x16xf32>
    %382 = arith.mulf %378, %377 : vector<2x16xf32>
    %383 = arith.addf %381, %382 : vector<2x16xf32>
    %384 = math.tanh %383 : vector<2x16xf32>
    %385 = arith.mulf %380, %384 : vector<2x16xf32>
    %386 = arith.truncf %385 : vector<2x16xf32> to vector<2x16xbf16>
    %c0_76 = arith.constant 0 : index
    %c0_77 = arith.constant 0 : index
    %387 = vector.load %arg8[%c0_76, %c0_77] : memref<16x4xbf16, #tpu.memory_space<vmem>>, vector<16x4xbf16>
    %cst_78 = arith.constant dense<0.000000e+00> : vector<2x4xf32>
    %388 = tpu.matmul %386, %387, %cst_78 {dimension_numbers = #tpu.dot_dimension_numbers<[1], [0], [0], [1], [0, 0, 1, 1], [], []>} : vector<2x16xbf16>, vector<16x4xbf16>, vector<2x4xf32> -> vector<2x4xf32>
    %c0_79 = arith.constant 0 : index
    %c0_80 = arith.constant 0 : index
    %389 = vector.load %arg1[%c0_79, %c0_80] : memref<2x5xbf16, #tpu.memory_space<vmem>>, vector<2x5xbf16>
    %c0_81 = arith.constant 0 : index
    %c0_82 = arith.constant 0 : index
    %390 = vector.load %arg9[%c0_81, %c0_82] : memref<5x4xbf16, #tpu.memory_space<vmem>>, vector<5x4xbf16>
    %cst_83 = arith.constant dense<0.000000e+00> : vector<2x4xf32>
    %391 = tpu.matmul %389, %390, %cst_83 {dimension_numbers = #tpu.dot_dimension_numbers<[1], [0], [0], [1], [0, 0, 1, 1], [], []>} : vector<2x5xbf16>, vector<5x4xbf16>, vector<2x4xf32> -> vector<2x4xf32>
    %392 = arith.addf %388, %391 : vector<2x4xf32>
    %c0_84 = arith.constant 0 : index
    %c0_85 = arith.constant 0 : index
    %393 = vector.load %arg10[%c0_84, %c0_85] : memref<1x4xf32, #tpu.memory_space<vmem>>, vector<1x4xf32>
    %394 = vector.broadcast %393 : vector<1x4xf32> to vector<2x4xf32>
    %395 = arith.addf %392, %394 : vector<2x4xf32>
    %c0_86 = arith.constant 0 : index
    %c0_87 = arith.constant 0 : index
    %396 = vector.load %arg11[%c0_86, %c0_87] : memref<2x4xf32, #tpu.memory_space<vmem>>, vector<2x4xf32>
    tpu.vector_store %arg11[%c0_86, %c0_87], %395 {strides = array<i32>} : memref<2x4xf32, #tpu.memory_space<vmem>>, vector<2x4xf32>,
    return
  }
}

</mosaic_0001>

<bundles_post_ra>
// kernel: tpu_custom_call.1
= control target key start
LH: loop header
LB: loop body
LE: loop exit
PB: predicated region body
PF: predicated region fallthrough
CT: control target
= control target key end

     0   :  { %16 = vsyncpa [#allocation4], 0  ;;  %s2068_s0 = inlined_call_operand.vmem [shape: bf16[16,64], index: 0, kind: input, shape index: {}]   ;;  %s2069_s1 = inlined_call_operand.vmem [shape: bf16[2,5], index: 1, kind: input, shape index: {}]   ;;  %s2070_s2 = inlined_call_operand.hbm [shape: bf16[64,128], index: 2, kind: input, shape index: {}]   ;;  %s2071_s3 = inlined_call_operand.vmem [shape: f32[1,128], index: 3, kind: input, shape index: {}]   ;;  %s2072_s4 = inlined_call_operand.hbm [shape: bf16[32,128], index: 4, kind: input, shape index: {}]   ;;  %s2073_s5 = inlined_call_operand.hbm [shape: bf16[32,64], index: 5, kind: input, shape index: {}]   ;;  %s2074_s6 = inlined_call_operand.vmem [shape: f32[1,64], index: 6, kind: input, shape index: {}]   ;;  %s2075_s7 = inlined_call_operand.hbm [shape: bf16[16,64], index: 7, kind: input, shape index: {}]   ;;  %s2076_s8 = inlined_call_operand.vmem [shape: bf16[16,4], index: 8, kind: input, shape index: {}]   ;;  %s2077_s9 = inlined_call_operand.vmem [shape: bf16[5,4], index: 9, kind: input, shape index: {}]   ;;  %s2078_s10 = inlined_call_operand.vmem [shape: f32[1,4], index: 10, kind: input, shape index: {}]   ;;  %s2079_s11 = inlined_call_operand.hbm [shape: f32[2,4], index: 11, kind: output, shape index: {}]  }
   0x1   :  { %17 = vsyncpa [#allocation7], 0 }
   0x2   :  { %18 = vsyncpa [#allocation10], 0 }
   0x3   :  { %19 = vsyncpa [#allocation5], 0  ;;  %s43_s19 = sshll.u32 %s2072_s4, 4  ;;  %s1778_s20 = smov [#allocation6]   ;;  %s44_s19 = int_to_ptr.hbm [resolvable:$true] %s43_s19 }
   0x4   :  { %s45_s21 = sshll.u32 %s1778_s20, 4  ;;  %s28_s24 = sshll.u32 %s2070_s2, 4  ;;  %s46_s21 = int_to_ptr.vmem [resolvable:$true] %s45_s21  ;;  %s29_s24 = int_to_ptr.hbm [resolvable:$true] %s28_s24 }
   0x5   :  { %s1779_s25 = smov 64   ;;  %s1780_s26 = smov 4  }
   0x6   :  { %51 = dma.hbm_to_vmem [thread:$0]  %s44_s19, 256, %s46_s21, [#allocation7], %s1779_s25, %s1779_s25, %s1780_s26  }
   0x7   :  { %s1781_s27 = smov [#allocation3]   ;;  %s56_s4 = sshll.u32 %s2073_s5, 4  ;;  %s57_s4 = int_to_ptr.hbm [resolvable:$true] %s56_s4 }
   0x8   :  { %s30_s28 = sshll.u32 %s1781_s27, 4  ;;  %s71_s2 = sshll.u32 %s2075_s7, 4  ;;  %s31_s28 = int_to_ptr.vmem [resolvable:$true] %s30_s28  ;;  %s72_s2 = int_to_ptr.hbm [resolvable:$true] %s71_s2 }
   0x9   :  { %36 = dma.hbm_to_vmem [thread:$0]  %s29_s24, 512, %s31_s28, [#allocation4], %s1779_s25, %s1779_s25, %s1780_s26  }
   0xa   :  { %s1782_s14 = smov [#allocation8]   ;;  %s1783_s16 = smov [#allocation9]  }
   0xb   :  { %s58_s15 = sshll.u32 %s1782_s14, 4  ;;  %s73_s17 = sshll.u32 %s1783_s16, 4  ;;  %s59_s15 = int_to_ptr.vmem [resolvable:$true] %s58_s15  ;;  %s74_s17 = int_to_ptr.vmem [resolvable:$true] %s73_s17 }
   0xc   :  { %64 = dma.hbm_to_vmem [thread:$0]  %s57_s4, 256, %s59_s15, [#allocation7], %s1779_s25, %s1779_s25, %s1780_s26  }
   0xd   :  { %79 = dma.hbm_to_vmem [thread:$0]  %s72_s2, 128, %s74_s17, [#allocation10], %s1779_s25, %s1779_s25, %s1780_s26  }
   0xe   :  { %1770 = dma.done.wait [#allocation4], 512  }
   0xf   :  { %1771 = vsyncadd [#allocation4], 4294966784 }
  0x10   :  { %1772 = dma.done.wait [#allocation7], 512  }
  0x11   :  { %1773 = vsyncadd [#allocation7], 4294966784 }
  0x12   :  { %1774 = dma.done.wait [#allocation10], 128  }
  0x13   :  { %1775 = vsyncadd [#allocation10], 4294967168  ;;  %v1479_v0 = vld [vmem:[#allocation3 + $0x18] sm:$0xff]  ;;  %v1481_v1 = vld [vmem:[#allocation6 + $0x8] sm:$0xff]  ;;  %v1784_v5 = vmov 0   ;;  %vm146_vm0 = vcmask 523264  }
  0x14   :  { %v1478_v2 = vld [vmem:[#allocation3 + $0x10] sm:$0xff]  ;;  %154 = vmatpush.bf16.msra.mxu0 %v1479_v0  ;;  %192 = vmatpush.bf16.msra.mxu1 %v1481_v1  ;;  %v1480_v3 = vld [vmem:[#allocation6] sm:$0xff]  ;;  %v1477_v4 = vld [vmem:[#allocation3 + $0x8] sm:$0xff]  ;;  %vm182_vm5 = vcmask 261120   ;;  %s1786_s21 = smov 80   ;;  %s1788_s22 = smov 96  }
  0x15   :  { %261 = vmatpush.bf16.msra.mxu2 %v1481_v1  ;;  %337 = vmatpush.bf16.msra.mxu3 %v1481_v1  ;;  %v1476_v6 = vld [vmem:[#allocation3] sm:$0xff]  ;;  %v1475_v7 = vld [vmem:[%s2068_s0] sm:$0xff]  ;;  %s1785_s0 = smov 32   ;;  %s1790_s29 = smov [#allocation11]  }
  0x16   :  { %v1878_v9 = vld [vmem:[%s2071_s3] ss:$0 sm:$0xff]  ;;  %s1383_s30 = sshll.u32 %s1790_s29, 4  ;;  %s1385_s12 = sshll.u32 %s2079_s11, 4  ;;  %s1384_s30 = int_to_ptr.vmem [resolvable:$true] %s1383_s30  ;;  %s1386_s12 = int_to_ptr.hbm [resolvable:$true] %s1385_s12 }
  0x18   :  { %155 = vmatpush.bf16.msra.mxu0 %v1478_v2  ;;  %193 = vmatpush.bf16.msra.mxu1 %v1480_v3 }
  0x19   :  { %262 = vmatpush.bf16.msra.mxu2 %v1480_v3  ;;  %338 = vmatpush.bf16.msra.mxu3 %v1480_v3 }
  0x1b   :  { %194 = vmatmul.bf16.vlgmr.msra.gmra.mxu1 %v1784_v5 }
  0x1c   :  { %413 = vmatpush.bf16.msrb.mxu1 %v1481_v1  ;;  %156 = vmatpush.bf16.msra.mxu0 %v1477_v4 }
  0x1d   :  { %489 = vmatpush.bf16.msrb.mxu2 %v1481_v1  ;;  %559 = vmatpush.bf16.msrb.mxu3 %v1481_v1 }
  0x20   :  { %414 = vmatpush.bf16.msrb.mxu1 %v1480_v3  ;;  %157 = vmatpush.bf16.msra.mxu0 %v1476_v6 }
  0x21   :  { %490 = vmatpush.bf16.msrb.mxu2 %v1480_v3  ;;  %560 = vmatpush.bf16.msrb.mxu3 %v1480_v3 }
  0x23   :  { %1417 = vmatmul.msk.bf16.vlgmr.msra.gmra.mxu0 %vm146_vm0, %v1475_v7 }
  0x24   :  { %707 = vmatpush.bf16.msra.mxu1 %v1481_v1  ;;  %633 = vmatpush.bf16.msrb.mxu0 %v1481_v1 }
  0x28   :  { %708 = vmatpush.bf16.msra.mxu1 %v1480_v3  ;;  %634 = vmatpush.bf16.msrb.mxu0 %v1480_v3 }
  0x98   :  { %v195_v8 = vpop.f32.mrf.mxu1 }
  0xa0   :  { %v159_v10 = vpop.f32.mrf.mxu0  ;;  %v197_v11 = vpop.f32.mrf.mxu1 }
  0xa1   :  { %v1881_v12 = vadd.f32 %v1878_v9, %v159_v10 }
  0xa3   :  { %v199_v13 = vadd.f32 %v195_v8, %v1881_v12 }
  0xa5   :  { %1522 = vtanh.f32 %v199_v13  ;;  %v1426_v15 = vmul.f32 -1.442695, %v199_v13 }
  0xa7   :  { %1524 = vpow2.f32 %v1426_v15 }
  0xab   :  { %v1523_v14 = vpop.eup %1522 }
  0xac   :  { %222 = vrot.lane.b32.xlu0 %v1523_v14, %s1785_s0 }
  0xad   :  { %v1525_v16 = vpop.eup %1524 }
  0xae   :  { %v203_v17 = vadd.f32 1.0, %v1525_v16 }
  0xb0   :  { %1526 = vrcp.f32 %v203_v17  ;;  %v215_v23 = vand.u32 2147483648, %v203_v17  ;;  %vm209_vm2 = vweird.f32 %v203_v17  ;;  %v213_v24 = vand.u32 2147483647, %v203_v17 }
  0xb2   :  { %v216_v26 = vor.u32 1.1754944e-38, %v215_v23  ;;  %vm214_vm4 = vcmp.eq.f32.partialorder %v213_v24, 8.507059e+37 }
  0xb6   :  { %v1527_v18 = vpop.eup %1526 }
  0xb7   :  { %v205_v19 = vmul.f32 %v1527_v18, %v203_v17  ;;  %vm210_vm1 = vweird.f32 %v1527_v18 }
  0xb8   :  { %vm211_vm3 = vmor %vm209_vm2, %vm210_vm1 }
  0xb9   :  { %v206_v20 = vsub.f32 1.0, %v205_v19 }
  0xbb   :  { %v207_v21 = vmul.f32 %v1527_v18, %v206_v20 }
  0xbd   :  { %v208_v22 = vadd.f32 %v1527_v18, %v207_v21 }
  0xbf   :  { %v212_v25 = vsel %vm211_vm3, %v1527_v18, %v208_v22 }
  0xc0   :  { %v217_v28 = vsel %vm214_vm4, %v216_v26, %v212_v25 }
  0xc1   :  { %v220_v30 = vmul.f32 0.0, %v217_v28 }
 0x11e   :  { %v223_v27 = vpop.permute.xlu0 %222 }
 0x11f   :  { %v225_v29 = vmul.f32 %v223_v27, %v217_v28 }
 0x121   :  { %227 = vrot.lane.b32.xlu0 %v225_v29, %s1785_s0 }
 0x193   :  { %v228_v31 = vpop.permute.xlu0 %227 }
 0x194   :  { %v230_v32 = vadd.f32 %v228_v31, %v220_v30 }
 0x196   :  { %1528 = vtanh.f32 %v230_v32  ;;  %v293_v60 = vrot.slane %v230_v32, 6 }
 0x19c   :  { %v1529_v33 = vpop.eup %1528 }
 0x19d   :  { %233 = vrot.lane.b32.xlu1 %v1529_v33, %s1785_s0 }
 0x20f   :  { %v234_v34 = vpop.permute.xlu1 %233 }
 0x210   :  { %v1887_v35 = vmul.f32 %v234_v34, %v217_v28 }
 0x212   :  { %v237_v36 = vpack.c.bf16 %v1887_v35, %v1887_v35 }
 0x214   :  { %v248_v37 = vunpack.c.l.b16 %v237_v36 }
 0x216   :  { %v249_v38 = vpack.c.b16 %v248_v37, %v248_v37 }
 0x218   :  { %250 = vrot.lane.b32.xlu1 %v249_v38, %s1779_s25 }
 0x28a   :  { %v251_v39 = vpop.permute.xlu1 %250 }
 0x28b   :  { %1427 = vmatmul.msk.bf16.vlgmr.msra.gmra.mxu2 %vm182_vm5, %v251_v39 }
 0x30e   :  { %v264_v40 = vpop.f32.mrf.mxu2 }
 0x30f   :  { %v269_v41 = vrot.slane %v264_v40, 6 }
 0x311   :  { %v271_v42 = vadd.f32 %v269_v41, %v1881_v12 }
 0x313   :  { %1530 = vtanh.f32 %v271_v42  ;;  %v1428_v45 = vmul.f32 -1.442695, %v271_v42 }
 0x315   :  { %1532 = vpow2.f32 %v1428_v45 }
 0x316   :  { %v266_v43 = vpop.f32.mrf.mxu2 }
 0x319   :  { %v1531_v44 = vpop.eup %1530 }
 0x31a   :  { %297 = vrot.lane.b32.xlu2 %v1531_v44, %s1785_s0 }
 0x31b   :  { %v1533_v46 = vpop.eup %1532 }
 0x31c   :  { %v275_v47 = vadd.f32 1.0, %v1533_v46 }
 0x31e   :  { %1534 = vrcp.f32 %v275_v47  ;;  %v287_v53 = vand.u32 2147483648, %v275_v47  ;;  %vm281_vm7 = vweird.f32 %v275_v47  ;;  %v285_v54 = vand.u32 2147483647, %v275_v47 }
 0x320   :  { %v288_v56 = vor.u32 1.1754944e-38, %v287_v53  ;;  %vm286_vm9 = vcmp.eq.f32.partialorder %v285_v54, 8.507059e+37 }
 0x324   :  { %v1535_v48 = vpop.eup %1534 }
 0x325   :  { %v277_v49 = vmul.f32 %v1535_v48, %v275_v47  ;;  %vm282_vm6 = vweird.f32 %v1535_v48 }
 0x326   :  { %vm283_vm8 = vmor %vm281_vm7, %vm282_vm6 }
 0x327   :  { %v278_v50 = vsub.f32 1.0, %v277_v49 }
 0x329   :  { %v279_v51 = vmul.f32 %v1535_v48, %v278_v50 }
 0x32b   :  { %v280_v52 = vadd.f32 %v1535_v48, %v279_v51 }
 0x32d   :  { %v284_v55 = vsel %vm283_vm8, %v1535_v48, %v280_v52 }
 0x32e   :  { %v289_v58 = vsel %vm286_vm9, %v288_v56, %v284_v55 }
 0x32f   :  { %v295_v61 = vmul.f32 %v293_v60, %v289_v58 }
 0x374   :  { %v298_v57 = vpop.permute.xlu2 %297 }
 0x375   :  { %v300_v59 = vmul.f32 %v298_v57, %v289_v58 }
 0x377   :  { %302 = vrot.lane.b32.xlu2 %v300_v59, %s1785_s0 }
 0x3d1   :  { %v303_v62 = vpop.permute.xlu2 %302 }
 0x3d2   :  { %v305_v63 = vadd.f32 %v303_v62, %v295_v61 }
 0x3d4   :  { %1536 = vtanh.f32 %v305_v63  ;;  %v369_v32 = vrot.slane %v305_v63, 6 }
 0x3da   :  { %v1537_v0 = vpop.eup %1536 }
 0x3db   :  { %308 = vrot.lane.b32.xlu0 %v1537_v0, %s1785_s0 }
 0x44d   :  { %v309_v1 = vpop.permute.xlu0 %308 }
 0x44e   :  { %v1897_v2 = vmul.f32 %v309_v1, %v289_v58 }
 0x450   :  { %v312_v3 = vpack.c.bf16 %v1897_v2, %v1897_v2  ;;  %v1499_v7 = vpack.i.bf16 %v1897_v2, %v1887_v35 }
 0x452   :  { %v323_v4 = vunpack.c.l.b16 %v312_v3 }
 0x454   :  { %v324_v6 = vpack.c.b16 %v323_v4, %v323_v4 }
 0x456   :  { %v325_v8 = vrot.slane %v324_v6, 1 }
 0x458   :  { %326 = vrot.lane.b32.xlu1 %v325_v8, %s1779_s25 }
 0x4ca   :  { %v327_v10 = vpop.permute.xlu1 %326 }
 0x4cb   :  { %1429 = vmatmul.msk.bf16.vlgmr.msra.gmra.mxu3 %vm182_vm5, %v327_v10 }
 0x54e   :  { %v340_v11 = vpop.f32.mrf.mxu3 }
 0x54f   :  { %v345_v13 = vrot.slane %v340_v11, 4 }
 0x551   :  { %v347_v14 = vadd.f32 %v345_v13, %v1881_v12 }
 0x553   :  { %1538 = vtanh.f32 %v347_v14  ;;  %v1430_v17 = vmul.f32 -1.442695, %v347_v14 }
 0x555   :  { %1540 = vpow2.f32 %v1430_v17 }
 0x556   :  { %v342_v15 = vpop.f32.mrf.mxu3 }
 0x559   :  { %v1539_v16 = vpop.eup %1538 }
 0x55a   :  { %373 = vrot.lane.b32.xlu2 %v1539_v16, %s1785_s0 }
 0x55b   :  { %v1541_v18 = vpop.eup %1540 }
 0x55c   :  { %v351_v19 = vadd.f32 1.0, %v1541_v18  ;;  %v161_v18 = vpop.f32.mrf.mxu0 }
 0x55e   :  { %1542 = vrcp.f32 %v351_v19  ;;  %v363_v25 = vand.u32 2147483648, %v351_v19  ;;  %vm357_vm11 = vweird.f32 %v351_v19  ;;  %v361_v26 = vand.u32 2147483647, %v351_v19 }
 0x560   :  { %v364_v28 = vor.u32 1.1754944e-38, %v363_v25  ;;  %vm362_vm13 = vcmp.eq.f32.partialorder %v361_v26, 8.507059e+37 }
 0x564   :  { %v1543_v20 = vpop.eup %1542 }
 0x565   :  { %v353_v21 = vmul.f32 %v1543_v20, %v351_v19  ;;  %vm358_vm10 = vweird.f32 %v1543_v20  ;;  %v1928_v19 = vadd.f32 %v1878_v9, %v161_v18 }
 0x566   :  { %vm359_vm12 = vmor %vm357_vm11, %vm358_vm10 }
 0x567   :  { %v354_v22 = vsub.f32 1.0, %v353_v21 }
 0x569   :  { %v355_v23 = vmul.f32 %v1543_v20, %v354_v22 }
 0x56b   :  { %v356_v24 = vadd.f32 %v1543_v20, %v355_v23 }
 0x56d   :  { %v360_v27 = vsel %vm359_vm12, %v1543_v20, %v356_v24 }
 0x56e   :  { %v365_v30 = vsel %vm362_vm13, %v364_v28, %v360_v27 }
 0x56f   :  { %v371_v33 = vmul.f32 %v369_v32, %v365_v30 }
 0x5b4   :  { %v374_v29 = vpop.permute.xlu2 %373 }
 0x5b5   :  { %v376_v31 = vmul.f32 %v374_v29, %v365_v30 }
 0x5b7   :  { %378 = vrot.lane.b32.xlu0 %v376_v31, %s1785_s0 }
 0x629   :  { %v379_v34 = vpop.permute.xlu0 %378 }
 0x62a   :  { %v381_v36 = vadd.f32 %v379_v34, %v371_v33 }
 0x62c   :  { %1544 = vtanh.f32 %v381_v36  ;;  %v445_v0 = vrot.slane %v381_v36, 6 }
 0x632   :  { %v1545_v37 = vpop.eup %1544 }
 0x633   :  { %384 = vrot.lane.b32.xlu1 %v1545_v37, %s1785_s0 }
 0x6a5   :  { %v385_v38 = vpop.permute.xlu1 %384 }
 0x6a6   :  { %v1909_v39 = vmul.f32 %v385_v38, %v365_v30 }
 0x6a8   :  { %v388_v40 = vpack.c.bf16 %v1909_v39, %v1909_v39 }
 0x6aa   :  { %v399_v41 = vunpack.c.l.b16 %v388_v40 }
 0x6ac   :  { %v400_v42 = vpack.c.b16 %v399_v41, %v399_v41 }
 0x6ae   :  { %v401_v43 = vrot.slane %v400_v42, 2 }
 0x6b0   :  { %402 = vrot.lane.b32.xlu2 %v401_v43, %s1779_s25 }
 0x70a   :  { %v403_v44 = vpop.permute.xlu2 %402 }
 0x70b   :  { %1431 = vmatmul.msk.bf16.vlgmr.msrb.gmra.mxu1 %vm182_vm5, %v403_v44 }
 0x788   :  { %v416_v45 = vpop.f32.mrf.mxu1 }
 0x789   :  { %v421_v46 = vrot.slane %v416_v45, 2 }
 0x78b   :  { %v423_v47 = vadd.f32 %v421_v46, %v1881_v12 }
 0x78d   :  { %1546 = vtanh.f32 %v423_v47  ;;  %v1432_v50 = vmul.f32 -1.442695, %v423_v47 }
 0x78f   :  { %1548 = vpow2.f32 %v1432_v50 }
 0x790   :  { %v418_v48 = vpop.f32.mrf.mxu1 }
 0x793   :  { %v1547_v49 = vpop.eup %1546 }
 0x794   :  { %449 = vrot.lane.b32.xlu0 %v1547_v49, %s1785_s0 }
 0x795   :  { %v1549_v51 = vpop.eup %1548 }
 0x796   :  { %v427_v52 = vadd.f32 1.0, %v1549_v51 }
 0x798   :  { %1550 = vrcp.f32 %v427_v52  ;;  %v439_v58 = vand.u32 2147483648, %v427_v52  ;;  %vm433_vm15 = vweird.f32 %v427_v52  ;;  %v437_v59 = vand.u32 2147483647, %v427_v52 }
 0x79a   :  { %v440_v60 = vor.u32 1.1754944e-38, %v439_v58  ;;  %vm438_vm1 = vcmp.eq.f32.partialorder %v437_v59, 8.507059e+37 }
 0x79e   :  { %v1551_v53 = vpop.eup %1550 }
 0x79f   :  { %v429_v54 = vmul.f32 %v1551_v53, %v427_v52  ;;  %vm434_vm14 = vweird.f32 %v1551_v53 }
 0x7a0   :  { %vm435_vm0 = vmor %vm433_vm15, %vm434_vm14 }
 0x7a1   :  { %v430_v55 = vsub.f32 1.0, %v429_v54 }
 0x7a3   :  { %v431_v56 = vmul.f32 %v1551_v53, %v430_v55 }
 0x7a5   :  { %v432_v57 = vadd.f32 %v1551_v53, %v431_v56 }
 0x7a7   :  { %v436_v12 = vsel %vm435_vm0, %v1551_v53, %v432_v57 }
 0x7a8   :  { %v441_v62 = vsel %vm438_vm1, %v440_v60, %v436_v12 }
 0x7a9   :  { %v447_v1 = vmul.f32 %v445_v0, %v441_v62 }
 0x806   :  { %v450_v61 = vpop.permute.xlu0 %449 }
 0x807   :  { %v452_v63 = vmul.f32 %v450_v61, %v441_v62 }
 0x809   :  { %454 = vrot.lane.b32.xlu1 %v452_v63, %s1785_s0 }
 0x87b   :  { %v455_v3 = vpop.permute.xlu1 %454 }
 0x87c   :  { %v457_v4 = vadd.f32 %v455_v3, %v447_v1 }
 0x87e   :  { %1552 = vtanh.f32 %v457_v4  ;;  %v518_v40 = vrot.slane %v457_v4, 6 }
 0x884   :  { %v1553_v6 = vpop.eup %1552 }
 0x885   :  { %460 = vrot.lane.b32.xlu2 %v1553_v6, %s1785_s0 }
 0x8df   :  { %v461_v8 = vpop.permute.xlu2 %460 }
 0x8e0   :  { %v1919_v10 = vmul.f32 %v461_v8, %v441_v62 }
 0x8e2   :  { %v464_v11 = vpack.c.bf16 %v1919_v10, %v1919_v10  ;;  %v1504_v15 = vpack.i.bf16 %v1919_v10, %v1909_v39  ;;  %v1484_v39 = vld [vmem:[#allocation8 + $0x8] sm:$0xff] }
 0x8e3   :  { %798 = vmatpush.bf16.msra.mxu2 %v1484_v39 }
 0x8e4   :  { %v475_v13 = vunpack.c.l.b16 %v464_v11 }
 0x8e6   :  { %v476_v14 = vpack.c.b16 %v475_v13, %v475_v13 }
 0x8e8   :  { %v477_v16 = vrot.slane %v476_v14, 3 }
 0x8ea   :  { %478 = vrot.lane.b32.xlu0 %v477_v16, %s1779_s25 }
 0x95c   :  { %v479_v17 = vpop.permute.xlu0 %478 }
 0x95d   :  { %1433 = vmatmul.msk.bf16.vlgmr.msrb.gmra.mxu2 %vm182_vm5, %v479_v17 }
 0x9e0   :  { %v492_v20 = vpop.f32.mrf.mxu2 }
 0x9e1   :  { %v496_v21 = vadd.f32 %v492_v20, %v1928_v19 }
 0x9e3   :  { %1554 = vtanh.f32 %v496_v21  ;;  %v1434_v24 = vmul.f32 -1.442695, %v496_v21 }
 0x9e5   :  { %1556 = vpow2.f32 %v1434_v24 }
 0x9e8   :  { %v494_v22 = vpop.f32.mrf.mxu2 }
 0x9e9   :  { %v1555_v23 = vpop.eup %1554 }
 0x9ea   :  { %522 = vrot.lane.b32.xlu1 %v1555_v23, %s1785_s0 }
 0x9eb   :  { %v1557_v25 = vpop.eup %1556 }
 0x9ec   :  { %v500_v26 = vadd.f32 1.0, %v1557_v25 }
 0x9ee   :  { %1558 = vrcp.f32 %v500_v26  ;;  %v512_v9 = vand.u32 2147483648, %v500_v26  ;;  %vm506_vm3 = vweird.f32 %v500_v26  ;;  %v510_v32 = vand.u32 2147483647, %v500_v26 }
 0x9f0   :  { %v513_v34 = vor.u32 1.1754944e-38, %v512_v9  ;;  %vm511_vm6 = vcmp.eq.f32.partialorder %v510_v32, 8.507059e+37 }
 0x9f4   :  { %v1559_v27 = vpop.eup %1558 }
 0x9f5   :  { %v502_v28 = vmul.f32 %v1559_v27, %v500_v26  ;;  %vm507_vm2 = vweird.f32 %v1559_v27 }
 0x9f6   :  { %vm508_vm4 = vmor %vm506_vm3, %vm507_vm2  ;;  %vm318_vm3 = vcmask 125954  }
 0x9f7   :  { %v503_v29 = vsub.f32 1.0, %v502_v28 }
 0x9f9   :  { %v504_v30 = vmul.f32 %v1559_v27, %v503_v29 }
 0x9fb   :  { %v505_v31 = vadd.f32 %v1559_v27, %v504_v30 }
 0x9fd   :  { %v509_v33 = vsel %vm508_vm4, %v1559_v27, %v505_v31  ;;  %vm320_vm4 = vcmask 257154  }
 0x9fe   :  { %v514_v37 = vsel %vm511_vm6, %v513_v34, %v509_v33  ;;  %vm243_vm6 = vcmask 123904  }
 0x9ff   :  { %v520_v41 = vmul.f32 %v518_v40, %v514_v37 }
 0xa5c   :  { %v523_v36 = vpop.permute.xlu1 %522 }
 0xa5d   :  { %v525_v38 = vmul.f32 %v523_v36, %v514_v37 }
 0xa5f   :  { %527 = vrot.lane.b32.xlu2 %v525_v38, %s1785_s0 }
 0xab9   :  { %v528_v42 = vpop.permute.xlu2 %527 }
 0xaba   :  { %v530_v43 = vadd.f32 %v528_v42, %v520_v41 }
 0xabc   :  { %1560 = vtanh.f32 %v530_v43  ;;  %v591_v11 = vrot.slane %v530_v43, 6 }
 0xac2   :  { %v1561_v44 = vpop.eup %1560 }
 0xac3   :  { %533 = vrot.lane.b32.xlu0 %v1561_v44, %s1785_s0 }
 0xb35   :  { %v534_v45 = vpop.permute.xlu0 %533 }
 0xb36   :  { %v1934_v46 = vmul.f32 %v534_v45, %v514_v37 }
 0xb38   :  { %v537_v47 = vpack.c.bf16 %v1934_v46, %v1934_v46 }
 0xb3a   :  { %v546_v48 = vunpack.c.l.b16 %v537_v47 }
 0xb3c   :  { %v547_v49 = vpack.c.b16 %v546_v48, %v546_v48 }
 0xb3e   :  { %548 = vrot.lane.b32.xlu1 %v547_v49, %s1779_s25 }
 0xbb0   :  { %v549_v50 = vpop.permute.xlu1 %548 }
 0xbb1   :  { %1435 = vmatmul.msk.bf16.vlgmr.msrb.gmra.mxu3 %vm182_vm5, %v549_v50 }
 0xc34   :  { %v562_v51 = vpop.f32.mrf.mxu3 }
 0xc35   :  { %v567_v52 = vrot.slane %v562_v51, 6 }
 0xc37   :  { %v569_v53 = vadd.f32 %v567_v52, %v1928_v19 }
 0xc39   :  { %1562 = vtanh.f32 %v569_v53  ;;  %v1436_v56 = vmul.f32 -1.442695, %v569_v53 }
 0xc3b   :  { %1564 = vpow2.f32 %v1436_v56 }
 0xc3c   :  { %v564_v54 = vpop.f32.mrf.mxu3 }
 0xc3f   :  { %v1563_v55 = vpop.eup %1562 }
 0xc40   :  { %595 = vrot.lane.b32.xlu2 %v1563_v55, %s1785_s0 }
 0xc41   :  { %v1565_v57 = vpop.eup %1564 }
 0xc42   :  { %v573_v58 = vadd.f32 1.0, %v1565_v57 }
 0xc44   :  { %1566 = vrcp.f32 %v573_v58  ;;  %v585_v63 = vand.u32 2147483648, %v573_v58  ;;  %vm579_vm8 = vweird.f32 %v573_v58  ;;  %v583_v0 = vand.u32 2147483647, %v573_v58 }
 0xc46   :  { %v586_v3 = vor.u32 1.1754944e-38, %v585_v63  ;;  %vm584_vm10 = vcmp.eq.f32.partialorder %v583_v0, 8.507059e+37 }
 0xc4a   :  { %v1567_v59 = vpop.eup %1566 }
 0xc4b   :  { %v575_v12 = vmul.f32 %v1567_v59, %v573_v58  ;;  %vm580_vm7 = vweird.f32 %v1567_v59 }
 0xc4c   :  { %vm581_vm9 = vmor %vm579_vm8, %vm580_vm7  ;;  %vm245_vm7 = vcmask 255104   ;;  %vm470_vm8 = vcmask 130054  }
 0xc4d   :  { %v576_v60 = vsub.f32 1.0, %v575_v12 }
 0xc4f   :  { %v577_v61 = vmul.f32 %v1567_v59, %v576_v60 }
 0xc51   :  { %v578_v62 = vadd.f32 %v1567_v59, %v577_v61 }
 0xc53   :  { %v582_v1 = vsel %vm581_vm9, %v1567_v59, %v578_v62  ;;  %vm472_vm9 = vcmask 261254  }
 0xc54   :  { %v587_v6 = vsel %vm584_vm10, %v586_v3, %v582_v1  ;;  %vm394_vm10 = vcmask 128004  }
 0xc55   :  { %v593_v13 = vmul.f32 %v591_v11, %v587_v6 }
 0xc9a   :  { %v596_v4 = vpop.permute.xlu2 %595 }
 0xc9b   :  { %v598_v8 = vmul.f32 %v596_v4, %v587_v6 }
 0xc9d   :  { %600 = vrot.lane.b32.xlu0 %v598_v8, %s1785_s0 }
 0xd0f   :  { %v601_v14 = vpop.permute.xlu0 %600 }
 0xd10   :  { %v603_v16 = vadd.f32 %v601_v14, %v593_v13 }
 0xd12   :  { %1568 = vtanh.f32 %v603_v16  ;;  %v665_v49 = vrot.slane %v603_v16, 6 }
 0xd18   :  { %v1569_v17 = vpop.eup %1568 }
 0xd19   :  { %606 = vrot.lane.b32.xlu1 %v1569_v17, %s1785_s0 }
 0xd8b   :  { %v607_v18 = vpop.permute.xlu1 %606 }
 0xd8c   :  { %v1944_v20 = vmul.f32 %v607_v18, %v587_v6 }
 0xd8e   :  { %v610_v21 = vpack.c.bf16 %v1944_v20, %v1944_v20  ;;  %v1509_v24 = vpack.i.bf16 %v1944_v20, %v1934_v46  ;;  %v1483_v46 = vld [vmem:[#allocation8] sm:$0xff]  ;;  %v1482_v20 = vld [vmem:[#allocation9] sm:$0xff] }
 0xd8f   :  { %799 = vmatpush.bf16.msra.mxu2 %v1483_v46  ;;  %822 = vmatpush.bf16.msra.mxu3 %v1482_v20 }
 0xd90   :  { %v619_v22 = vunpack.c.l.b16 %v610_v21  ;;  %884 = vmatpush.bf16.msra.mxu0 %v1482_v20  ;;  %949 = vmatpush.bf16.msrb.mxu1 %v1482_v20 }
 0xd92   :  { %v620_v23 = vpack.c.b16 %v619_v22, %v619_v22  ;;  %823 = vmatmul.bf16.vlgmr.msra.gmra.mxu3 %v1784_v5 }
 0xd93   :  { %1014 = vmatpush.bf16.msrb.mxu2 %v1482_v20  ;;  %1075 = vmatpush.bf16.msrb.mxu3 %v1482_v20 }
 0xd94   :  { %v621_v25 = vrot.slane %v620_v23, 1 }
 0xd96   :  { %622 = vrot.lane.b32.xlu2 %v621_v25, %s1779_s25 }
 0xdf0   :  { %v623_v26 = vpop.permute.xlu2 %622 }
 0xdf1   :  { %1437 = vmatmul.msk.bf16.vlgmr.msrb.gmra.mxu0 %vm182_vm5, %v623_v26 }
 0xdf2   :  { %1140 = vmatpush.bf16.msrb.mxu0 %v1482_v20 }
 0xe15   :  { %v824_v5 = vpop.f32.mrf.mxu3 }
 0xe6e   :  { %v636_v27 = vpop.f32.mrf.mxu0 }
 0xe6f   :  { %v641_v28 = vrot.slane %v636_v27, 4 }
 0xe71   :  { %v643_v29 = vadd.f32 %v641_v28, %v1928_v19 }
 0xe73   :  { %1570 = vtanh.f32 %v643_v29  ;;  %v1438_v9 = vmul.f32 -1.442695, %v643_v29 }
 0xe75   :  { %1572 = vpow2.f32 %v1438_v9 }
 0xe76   :  { %v638_v30 = vpop.f32.mrf.mxu0 }
 0xe79   :  { %v1571_v31 = vpop.eup %1570 }
 0xe7a   :  { %669 = vrot.lane.b32.xlu0 %v1571_v31, %s1785_s0 }
 0xe7b   :  { %v1573_v32 = vpop.eup %1572 }
 0xe7c   :  { %v647_v33 = vadd.f32 1.0, %v1573_v32 }
 0xe7e   :  { %1574 = vrcp.f32 %v647_v33  ;;  %v659_v41 = vand.u32 2147483648, %v647_v33  ;;  %vm653_vm12 = vweird.f32 %v647_v33  ;;  %v657_v42 = vand.u32 2147483647, %v647_v33 }
 0xe80   :  { %v660_v44 = vor.u32 1.1754944e-38, %v659_v41  ;;  %vm658_vm14 = vcmp.eq.f32.partialorder %v657_v42, 8.507059e+37 }
 0xe84   :  { %v1575_v34 = vpop.eup %1574 }
 0xe85   :  { %v649_v36 = vmul.f32 %v1575_v34, %v647_v33  ;;  %vm654_vm11 = vweird.f32 %v1575_v34 }
 0xe86   :  { %vm655_vm13 = vmor %vm653_vm12, %vm654_vm11  ;;  %vm396_vm11 = vcmask 259204  }
 0xe87   :  { %v650_v37 = vsub.f32 1.0, %v649_v36 }
 0xe89   :  { %v651_v38 = vmul.f32 %v1575_v34, %v650_v37 }
 0xe8b   :  { %v652_v40 = vadd.f32 %v1575_v34, %v651_v38 }
 0xe8d   :  { %v656_v43 = vsel %vm655_vm13, %v1575_v34, %v652_v40 }
 0xe8e   :  { %v661_v47 = vsel %vm658_vm14, %v660_v44, %v656_v43  ;;  %v826_v43 = vpop.f32.mrf.mxu3  ;;  %v1520_v44 = vld [vmem:[%s2074_s6] ss:$0 sm:$0xff]  ;;  %s1787_s6 = smov 16  }
 0xe8f   :  { %v667_v50 = vmul.f32 %v665_v49, %v661_v47 }
 0xeec   :  { %v670_v45 = vpop.permute.xlu0 %669 }
 0xeed   :  { %v672_v48 = vmul.f32 %v670_v45, %v661_v47 }
 0xeef   :  { %674 = vrot.lane.b32.xlu1 %v672_v48, %s1785_s0  ;;  %v829_v48 = vrot.slane %v824_v5, 2 }
 0xf61   :  { %v675_v51 = vpop.permute.xlu1 %674 }
 0xf62   :  { %v677_v52 = vadd.f32 %v675_v51, %v667_v50 }
 0xf64   :  { %1576 = vtanh.f32 %v677_v52  ;;  %v739_v25 = vrot.slane %v677_v52, 6 }
 0xf6a   :  { %v1577_v53 = vpop.eup %1576 }
 0xf6b   :  { %680 = vrot.lane.b32.xlu2 %v1577_v53, %s1785_s0 }
 0xfc5   :  { %v681_v54 = vpop.permute.xlu2 %680 }
 0xfc6   :  { %v1956_v55 = vmul.f32 %v681_v54, %v661_v47 }
 0xfc8   :  { %v684_v56 = vpack.c.bf16 %v1956_v55, %v1956_v55 }
 0xfca   :  { %v693_v57 = vunpack.c.l.b16 %v684_v56 }
 0xfcc   :  { %v694_v58 = vpack.c.b16 %v693_v57, %v693_v57 }
 0xfce   :  { %v695_v59 = vrot.slane %v694_v58, 2 }
 0xfd0   :  { %696 = vrot.lane.b32.xlu0 %v695_v59, %s1779_s25 }
0x1042   :  { %v697_v12 = vpop.permute.xlu0 %696 }
0x1043   :  { %1439 = vmatmul.msk.bf16.vlgmr.msra.gmra.mxu1 %vm182_vm5, %v697_v12 }
0x1044   :  { %1205 = vmatpush.bf16.msra.mxu1 %v1482_v20 }
0x10c0   :  { %v710_v60 = vpop.f32.mrf.mxu1 }
0x10c1   :  { %v715_v61 = vrot.slane %v710_v60, 2 }
0x10c3   :  { %v717_v62 = vadd.f32 %v715_v61, %v1928_v19 }
0x10c5   :  { %1578 = vtanh.f32 %v717_v62  ;;  %v1440_v1 = vmul.f32 -1.442695, %v717_v62 }
0x10c7   :  { %1580 = vpow2.f32 %v1440_v1 }
0x10c8   :  { %v712_v63 = vpop.f32.mrf.mxu1 }
0x10cb   :  { %v1579_v0 = vpop.eup %1578 }
0x10cc   :  { %743 = vrot.lane.b32.xlu1 %v1579_v0, %s1785_s0 }
0x10cd   :  { %v1581_v3 = vpop.eup %1580 }
0x10ce   :  { %v721_v4 = vadd.f32 1.0, %v1581_v3 }
0x10d0   :  { %1582 = vrcp.f32 %v721_v4  ;;  %v733_v14 = vand.u32 2147483648, %v721_v4  ;;  %vm727_vm0 = vweird.f32 %v721_v4  ;;  %v731_v16 = vand.u32 2147483647, %v721_v4 }
0x10d2   :  { %v734_v18 = vor.u32 1.1754944e-38, %v733_v14  ;;  %vm732_vm2 = vcmp.eq.f32.partialorder %v731_v16, 8.507059e+37 }
0x10d4   :  { %1500 = vrot.lane.b32.xlu1 %v1499_v7, %s1779_s25 }
0x10d6   :  { %v1583_v6 = vpop.eup %1582 }
0x10d7   :  { %v723_v8 = vmul.f32 %v1583_v6, %v721_v4  ;;  %vm728_vm15 = vweird.f32 %v1583_v6 }
0x10d8   :  { %vm729_vm1 = vmor %vm727_vm0, %vm728_vm15  ;;  %vm812_vm15 = vcmask 130048  }
0x10d9   :  { %v724_v11 = vsub.f32 1.0, %v723_v8 }
0x10db   :  { %v725_v13 = vmul.f32 %v1583_v6, %v724_v11 }
0x10dd   :  { %v726_v19 = vadd.f32 %v1583_v6, %v725_v13 }
0x10df   :  { %v730_v17 = vsel %vm729_vm1, %v1583_v6, %v726_v19 }
0x10e0   :  { %v735_v2 = vsel %vm732_vm2, %v734_v18, %v730_v17 }
0x10e1   :  { %v741_v26 = vmul.f32 %v739_v25, %v735_v2 }
0x113e   :  { %v744_v35 = vpop.permute.xlu1 %743 }
0x113f   :  { %v746_v7 = vmul.f32 %v744_v35, %v735_v2 }
0x1141   :  { %748 = vrot.lane.b32.xlu2 %v746_v7, %s1785_s0 }
0x1146   :  { %v1501_v21 = vpop.permute.xlu1 %1500 }
0x1147   :  { %v1503_v22 = vunpack.i.h.bf16 %v1501_v21  ;;  %v1502_v23 = vunpack.i.l.bf16 %v1501_v21 }
0x1149   :  { %319 = vst.msk [vmem:[#allocation2] sm:$0xc] %vm318_vm3, %v1503_v22  ;;  %1505 = vrot.lane.b32.xlu2 %v1504_v15, %s1779_s25 }
0x114a   :  { %321 = vst.msk [vmem:[#allocation2 + $0xa] sm:$0xc] %vm320_vm4, %v1503_v22 }
0x114b   :  { %244 = vst.msk [vmem:[#allocation2] sm:$0x3] %vm243_vm6, %v1502_v23 }
0x114c   :  { %246 = vst.msk [vmem:[#allocation2 + $0xe] sm:$0x3] %vm245_vm7, %v1502_v23 }
0x119b   :  { %v749_v27 = vpop.permute.xlu2 %748 }
0x119c   :  { %v751_v28 = vadd.f32 %v749_v27, %v741_v26 }
0x119e   :  { %1584 = vtanh.f32 %v751_v28 }
0x11a3   :  { %v1506_v29 = vpop.permute.xlu2 %1505 }
0x11a4   :  { %v1585_v30 = vpop.eup %1584  ;;  %v1508_v31 = vunpack.i.h.bf16 %v1506_v29  ;;  %v1507_v9 = vunpack.i.l.bf16 %v1506_v29 }
0x11a5   :  { %754 = vrot.lane.b32.xlu0 %v1585_v30, %s1785_s0 }
0x11a6   :  { %471 = vst.msk [vmem:[#allocation2] sm:$0xc0] %vm470_vm8, %v1508_v31 }
0x11a7   :  { %473 = vst.msk [vmem:[#allocation2 + $0x2] sm:$0xc0] %vm472_vm9, %v1508_v31 }
0x11a8   :  { %395 = vst.msk [vmem:[#allocation2] sm:$0x30] %vm394_vm10, %v1507_v9 }
0x11a9   :  { %397 = vst.msk [vmem:[#allocation2 + $0x6] sm:$0x30] %vm396_vm11, %v1507_v9 }
0x11ad   :  { %1510 = vrot.lane.b32.xlu0 %v1509_v24, %s1779_s25 }
0x1217   :  { %v755_v10 = vpop.permute.xlu0 %754 }
0x1218   :  { %v757_v15 = vmul.f32 %v755_v10, %v735_v2 }
0x121a   :  { %v1514_v32 = vpack.i.bf16 %v757_v15, %v1956_v55 }
0x121c   :  { %1515 = vrot.lane.b32.xlu1 %v1514_v32, %s1779_s25 }
0x121f   :  { %v1511_v33 = vpop.permute.xlu0 %1510 }
0x1220   :  { %v1513_v34 = vunpack.i.h.bf16 %v1511_v33  ;;  %v1512_v36 = vunpack.i.l.bf16 %v1511_v33 }
0x1222   :  { %616 = vst.msk [vmem:[#allocation2 + $0x8] sm:$0xc] %vm318_vm3, %v1513_v34 }
0x1223   :  { %617 = vst.msk [vmem:[#allocation2 + $0x2] sm:$0xc] %vm320_vm4, %v1513_v34 }
0x1224   :  { %543 = vst.msk [vmem:[#allocation2 + $0x8] sm:$0x3] %vm243_vm6, %v1512_v36 }
0x1225   :  { %544 = vst.msk [vmem:[#allocation2 + $0x6] sm:$0x3] %vm245_vm7, %v1512_v36 }
0x128e   :  { %v1516_v24 = vpop.permute.xlu1 %1515 }
0x128f   :  { %v1518_v37 = vunpack.i.h.bf16 %v1516_v24  ;;  %v1517_v38 = vunpack.i.l.bf16 %v1516_v24 }
0x1291   :  { %690 = vst.msk [vmem:[#allocation2 + $0x8] sm:$0x30] %vm394_vm10, %v1517_v38 }
0x1292   :  { %691 = vst.msk [vmem:[#allocation2 - $0x2] sm:$0x30] %vm396_vm11, %v1517_v38 }
0x1293   :  { %764 = vst.msk [vmem:[#allocation2 + $0x8] sm:$0xc0] %vm470_vm8, %v1518_v37 }
0x1294   :  { %765 = vst.msk [vmem:[#allocation2 - $0x6] sm:$0xc0] %vm472_vm9, %v1518_v37 }
0x129a   :  { %v767_v40 = vld [vmem:[#allocation2 + $0x8] sm:$0xff] }
0x129b   :  { %v766_v41 = vld [vmem:[#allocation2] sm:$0xff] }
0x129c   :  { %v768_v42 = vpack.c.bf16 %v767_v40, %v766_v41 }
0x129e   :  { %1449 = vmatmul.msk.bf16.vlgmr.msra.gmra.mxu2 %vm182_vm5, %v768_v42 }
0x129f   :  { %1270 = vmatpush.bf16.msra.mxu2 %v1482_v20 }
0x1321   :  { %v801_v45 = vpop.f32.mrf.mxu2 }
0x1322   :  { %v2001_v47 = vadd.f32 %v1520_v44, %v801_v45 }
0x1329   :  { %v803_v49 = vpop.f32.mrf.mxu2 }
0x132a   :  { %v2003_v50 = vadd.f32 %v1520_v44, %v803_v49 }
0x132c   :  { %v831_v51 = vadd.f32 %v829_v48, %v2003_v50 }
0x132e   :  { %1586 = vtanh.f32 %v831_v51  ;;  %v1454_v53 = vmul.f32 -1.442695, %v831_v51 }
0x1330   :  { %1588 = vpow2.f32 %v1454_v53 }
0x1334   :  { %v1587_v52 = vpop.eup %1586 }
0x1335   :  { %854 = vrot.lane.b32.xlu2 %v1587_v52, %s1786_s21 }
0x1336   :  { %v1589_v54 = vpop.eup %1588 }
0x1337   :  { %v835_v55 = vadd.f32 1.0, %v1589_v54 }
0x1339   :  { %1590 = vrcp.f32 %v835_v55  ;;  %v847_v60 = vand.u32 2147483648, %v835_v55  ;;  %vm841_vm12 = vweird.f32 %v835_v55  ;;  %v845_v61 = vand.u32 2147483647, %v835_v55 }
0x133b   :  { %v848_v63 = vor.u32 1.1754944e-38, %v847_v60  ;;  %vm846_vm14 = vcmp.eq.f32.partialorder %v845_v61, 8.507059e+37 }
0x133f   :  { %v1591_v56 = vpop.eup %1590 }
0x1340   :  { %v837_v57 = vmul.f32 %v1591_v56, %v835_v55  ;;  %vm842_vm5 = vweird.f32 %v1591_v56 }
0x1341   :  { %vm843_vm13 = vmor %vm841_vm12, %vm842_vm5 }
0x1342   :  { %v838_v58 = vsub.f32 1.0, %v837_v57 }
0x1344   :  { %v839_v59 = vmul.f32 %v1591_v56, %v838_v58 }
0x1346   :  { %v840_v12 = vadd.f32 %v1591_v56, %v839_v59 }
0x1348   :  { %v844_v62 = vsel %vm843_vm13, %v1591_v56, %v840_v12 }
0x1349   :  { %v849_v1 = vsel %vm846_vm14, %v848_v63, %v844_v62 }
0x134a   :  { %v852_v4 = vmul.f32 0.0, %v849_v1 }
0x138f   :  { %v855_v0 = vpop.permute.xlu2 %854 }
0x1390   :  { %v857_v3 = vmul.f32 %v855_v0, %v849_v1 }
0x1392   :  { %859 = vrot.lane.b32.xlu0 %v857_v3, %s1787_s6 }
0x1404   :  { %v860_v6 = vpop.permute.xlu0 %859 }
0x1405   :  { %v862_v8 = vadd.f32 %v860_v6, %v852_v4 }
0x1407   :  { %1592 = vtanh.f32 %v862_v8  ;;  %v915_v34 = vrot.slane %v862_v8, 2 }
0x140d   :  { %v1593_v11 = vpop.eup %1592 }
0x140e   :  { %865 = vrot.lane.b32.xlu1 %v1593_v11, %s1787_s6 }
0x1480   :  { %v866_v13 = vpop.permute.xlu1 %865 }
0x1481   :  { %v868_v19 = vmul.f32 %v866_v13, %v849_v1 }
0x1483   :  { %v869_v14 = vpack.c.bf16 %v868_v19, %v868_v19 }
0x1485   :  { %v871_v16 = vrot.slane %v869_v14, 3 }
0x1487   :  { %872 = vrot.lane.b32.xlu2 %v871_v16, %s1788_s22 }
0x14e1   :  { %v873_v17 = vpop.permute.xlu2 %872 }
0x14e2   :  { %1455 = vmatmul.msk.bf16.vlgmr.msra.gmra.mxu0 %vm812_vm15, %v873_v17 }
0x155f   :  { %v886_v18 = vpop.f32.mrf.mxu0 }
0x1560   :  { %v891_v35 = vrot.slane %v886_v18, 4 }
0x1562   :  { %v893_v2 = vadd.f32 %v891_v35, %v2003_v50 }
0x1564   :  { %1594 = vtanh.f32 %v893_v2  ;;  %v1456_v22 = vmul.f32 -1.442695, %v893_v2 }
0x1566   :  { %1596 = vpow2.f32 %v1456_v22 }
0x1567   :  { %v888_v7 = vpop.f32.mrf.mxu0 }
0x156a   :  { %v1595_v21 = vpop.eup %1594 }
0x156b   :  { %919 = vrot.lane.b32.xlu0 %v1595_v21, %s1786_s21 }
0x156c   :  { %v1597_v23 = vpop.eup %1596 }
0x156d   :  { %v897_v25 = vadd.f32 1.0, %v1597_v23 }
0x156f   :  { %1598 = vrcp.f32 %v897_v25  ;;  %v909_v31 = vand.u32 2147483648, %v897_v25  ;;  %vm903_vm1 = vweird.f32 %v897_v25  ;;  %v907_v9 = vand.u32 2147483647, %v897_v25 }
0x1571   :  { %v910_v10 = vor.u32 1.1754944e-38, %v909_v31  ;;  %vm908_vm3 = vcmp.eq.f32.partialorder %v907_v9, 8.507059e+37 }
0x1575   :  { %v1599_v26 = vpop.eup %1598 }
0x1576   :  { %v899_v27 = vmul.f32 %v1599_v26, %v897_v25  ;;  %vm904_vm0 = vweird.f32 %v1599_v26 }
0x1577   :  { %vm905_vm2 = vmor %vm903_vm1, %vm904_vm0 }
0x1578   :  { %v900_v28 = vsub.f32 1.0, %v899_v27 }
0x157a   :  { %v901_v29 = vmul.f32 %v1599_v26, %v900_v28 }
0x157c   :  { %v902_v30 = vadd.f32 %v1599_v26, %v901_v29 }
0x157e   :  { %v906_v39 = vsel %vm905_vm2, %v1599_v26, %v902_v30 }
0x157f   :  { %v911_v32 = vsel %vm908_vm3, %v910_v10, %v906_v39 }
0x1580   :  { %v917_v36 = vmul.f32 %v915_v34, %v911_v32 }
0x15dd   :  { %v920_v15 = vpop.permute.xlu0 %919 }
0x15de   :  { %v922_v33 = vmul.f32 %v920_v15, %v911_v32 }
0x15e0   :  { %924 = vrot.lane.b32.xlu1 %v922_v33, %s1787_s6 }
0x1652   :  { %v925_v46 = vpop.permute.xlu1 %924 }
0x1653   :  { %v927_v20 = vadd.f32 %v925_v46, %v917_v36 }
0x1655   :  { %1600 = vtanh.f32 %v927_v20  ;;  %v980_v0 = vrot.slane %v927_v20, 2 }
0x165b   :  { %v1601_v24 = vpop.eup %1600 }
0x165c   :  { %930 = vrot.lane.b32.xlu2 %v1601_v24, %s1787_s6 }
0x16b6   :  { %v931_v37 = vpop.permute.xlu2 %930 }
0x16b7   :  { %v933_v38 = vmul.f32 %v931_v37, %v911_v32 }
0x16b9   :  { %v934_v40 = vpack.c.bf16 %v933_v38, %v933_v38 }
0x16bb   :  { %v936_v41 = vrot.slane %v934_v40, 2 }
0x16bd   :  { %937 = vrot.lane.b32.xlu0 %v936_v41, %s1788_s22 }
0x172f   :  { %v938_v42 = vpop.permute.xlu0 %937 }
0x1730   :  { %1457 = vmatmul.msk.bf16.vlgmr.msrb.gmra.mxu1 %vm812_vm15, %v938_v42 }
0x17ad   :  { %v951_v5 = vpop.f32.mrf.mxu1 }
0x17ae   :  { %v956_v43 = vrot.slane %v951_v5, 6 }
0x17b0   :  { %v958_v44 = vadd.f32 %v956_v43, %v2003_v50 }
0x17b2   :  { %1602 = vtanh.f32 %v958_v44  ;;  %v1458_v49 = vmul.f32 -1.442695, %v958_v44 }
0x17b4   :  { %1604 = vpow2.f32 %v1458_v49 }
0x17b5   :  { %v953_v45 = vpop.f32.mrf.mxu1 }
0x17b8   :  { %v1603_v48 = vpop.eup %1602 }
0x17b9   :  { %984 = vrot.lane.b32.xlu1 %v1603_v48, %s1786_s21 }
0x17ba   :  { %v1605_v51 = vpop.eup %1604 }
0x17bb   :  { %v962_v52 = vadd.f32 1.0, %v1605_v51 }
0x17bd   :  { %1606 = vrcp.f32 %v962_v52  ;;  %v974_v58 = vand.u32 2147483648, %v962_v52  ;;  %vm968_vm6 = vweird.f32 %v962_v52  ;;  %v972_v59 = vand.u32 2147483647, %v962_v52 }
0x17bf   :  { %v975_v60 = vor.u32 1.1754944e-38, %v974_v58  ;;  %vm973_vm8 = vcmp.eq.f32.partialorder %v972_v59, 8.507059e+37 }
0x17c3   :  { %v1607_v53 = vpop.eup %1606 }
0x17c4   :  { %v964_v54 = vmul.f32 %v1607_v53, %v962_v52  ;;  %vm969_vm4 = vweird.f32 %v1607_v53 }
0x17c5   :  { %vm970_vm7 = vmor %vm968_vm6, %vm969_vm4 }
0x17c6   :  { %v965_v55 = vsub.f32 1.0, %v964_v54 }
0x17c8   :  { %v966_v56 = vmul.f32 %v1607_v53, %v965_v55 }
0x17ca   :  { %v967_v57 = vadd.f32 %v1607_v53, %v966_v56 }
0x17cc   :  { %v971_v12 = vsel %vm970_vm7, %v1607_v53, %v967_v57 }
0x17cd   :  { %v976_v62 = vsel %vm973_vm8, %v975_v60, %v971_v12 }
0x17ce   :  { %v982_v1 = vmul.f32 %v980_v0, %v976_v62 }
0x182b   :  { %v985_v61 = vpop.permute.xlu1 %984 }
0x182c   :  { %v987_v63 = vmul.f32 %v985_v61, %v976_v62 }
0x182e   :  { %989 = vrot.lane.b32.xlu2 %v987_v63, %s1787_s6 }
0x1888   :  { %v990_v3 = vpop.permute.xlu2 %989 }
0x1889   :  { %v992_v4 = vadd.f32 %v990_v3, %v982_v1 }
0x188b   :  { %1608 = vtanh.f32 %v992_v4  ;;  %v1042_v10 = vrot.slane %v992_v4, 2 }
0x1891   :  { %v1609_v6 = vpop.eup %1608 }
0x1892   :  { %995 = vrot.lane.b32.xlu0 %v1609_v6, %s1787_s6 }
0x1904   :  { %v996_v8 = vpop.permute.xlu0 %995 }
0x1905   :  { %v998_v11 = vmul.f32 %v996_v8, %v976_v62 }
0x1907   :  { %v999_v13 = vpack.c.bf16 %v998_v11, %v998_v11 }
0x1909   :  { %v1001_v19 = vrot.slane %v999_v13, 1 }
0x190b   :  { %1002 = vrot.lane.b32.xlu1 %v1001_v19, %s1788_s22 }
0x197d   :  { %v1003_v14 = vpop.permute.xlu1 %1002 }
0x197e   :  { %1459 = vmatmul.msk.bf16.vlgmr.msrb.gmra.mxu2 %vm812_vm15, %v1003_v14 }
0x1a01   :  { %v1016_v16 = vpop.f32.mrf.mxu2 }
0x1a02   :  { %v1020_v17 = vadd.f32 %v1016_v16, %v2003_v50 }
0x1a04   :  { %1610 = vtanh.f32 %v1020_v17  ;;  %v1460_v2 = vmul.f32 -1.442695, %v1020_v17 }
0x1a06   :  { %1612 = vpow2.f32 %v1460_v2 }
0x1a09   :  { %v1018_v18 = vpop.f32.mrf.mxu2 }
0x1a0a   :  { %v1611_v35 = vpop.eup %1610 }
0x1a0b   :  { %1046 = vrot.lane.b32.xlu2 %v1611_v35, %s1786_s21 }
0x1a0c   :  { %v1613_v7 = vpop.eup %1612 }
0x1a0d   :  { %v1024_v21 = vadd.f32 1.0, %v1613_v7 }
0x1a0f   :  { %1614 = vrcp.f32 %v1024_v21  ;;  %v1036_v28 = vand.u32 2147483648, %v1024_v21  ;;  %vm1030_vm10 = vweird.f32 %v1024_v21  ;;  %v1034_v29 = vand.u32 2147483647, %v1024_v21 }
0x1a11   :  { %v1037_v30 = vor.u32 1.1754944e-38, %v1036_v28  ;;  %vm1035_vm5 = vcmp.eq.f32.partialorder %v1034_v29, 8.507059e+37 }
0x1a15   :  { %v1615_v22 = vpop.eup %1614 }
0x1a16   :  { %v1026_v23 = vmul.f32 %v1615_v22, %v1024_v21  ;;  %vm1031_vm9 = vweird.f32 %v1615_v22 }
0x1a17   :  { %vm1032_vm11 = vmor %vm1030_vm10, %vm1031_vm9 }
0x1a18   :  { %v1027_v25 = vsub.f32 1.0, %v1026_v23 }
0x1a1a   :  { %v1028_v26 = vmul.f32 %v1615_v22, %v1027_v25 }
0x1a1c   :  { %v1029_v27 = vadd.f32 %v1615_v22, %v1028_v26 }
0x1a1e   :  { %v1033_v50 = vsel %vm1032_vm11, %v1615_v22, %v1029_v27 }
0x1a1f   :  { %v1038_v9 = vsel %vm1035_vm5, %v1037_v30, %v1033_v50 }
0x1a20   :  { %v1044_v15 = vmul.f32 %v1042_v10, %v1038_v9 }
0x1a65   :  { %v1047_v31 = vpop.permute.xlu2 %1046 }
0x1a66   :  { %v1049_v39 = vmul.f32 %v1047_v31, %v1038_v9 }
0x1a68   :  { %1051 = vrot.lane.b32.xlu0 %v1049_v39, %s1787_s6 }
0x1ada   :  { %v1052_v32 = vpop.permute.xlu0 %1051 }
0x1adb   :  { %v1054_v33 = vadd.f32 %v1052_v32, %v1044_v15 }
0x1add   :  { %1616 = vtanh.f32 %v1054_v33  ;;  %v1106_v12 = vrot.slane %v1054_v33, 2 }
0x1ae3   :  { %v1617_v34 = vpop.eup %1616 }
0x1ae4   :  { %1057 = vrot.lane.b32.xlu1 %v1617_v34, %s1787_s6 }
0x1b56   :  { %v1058_v36 = vpop.permute.xlu1 %1057 }
0x1b57   :  { %v1060_v46 = vmul.f32 %v1058_v36, %v1038_v9 }
0x1b59   :  { %v1061_v20 = vpack.c.bf16 %v1060_v46, %v1060_v46 }
0x1b5b   :  { %1063 = vrot.lane.b32.xlu2 %v1061_v20, %s1788_s22 }
0x1bb5   :  { %v1064_v24 = vpop.permute.xlu2 %1063 }
0x1bb6   :  { %1461 = vmatmul.msk.bf16.vlgmr.msrb.gmra.mxu3 %vm812_vm15, %v1064_v24 }
0x1c39   :  { %v1077_v37 = vpop.f32.mrf.mxu3 }
0x1c3a   :  { %v1082_v38 = vrot.slane %v1077_v37, 2 }
0x1c3c   :  { %v1084_v40 = vadd.f32 %v1082_v38, %v2001_v47 }
0x1c3e   :  { %1618 = vtanh.f32 %v1084_v40  ;;  %v1462_v5 = vmul.f32 -1.442695, %v1084_v40 }
0x1c40   :  { %1620 = vpow2.f32 %v1462_v5 }
0x1c41   :  { %v1079_v41 = vpop.f32.mrf.mxu3 }
0x1c44   :  { %v1619_v42 = vpop.eup %1618 }
0x1c45   :  { %1110 = vrot.lane.b32.xlu0 %v1619_v42, %s1786_s21 }
0x1c46   :  { %v1621_v43 = vpop.eup %1620 }
0x1c47   :  { %v1088_v44 = vadd.f32 1.0, %v1621_v43 }
0x1c49   :  { %1622 = vrcp.f32 %v1088_v44  ;;  %v1100_v53 = vand.u32 2147483648, %v1088_v44  ;;  %vm1094_vm13 = vweird.f32 %v1088_v44  ;;  %v1098_v54 = vand.u32 2147483647, %v1088_v44 }
0x1c4b   :  { %v1101_v56 = vor.u32 1.1754944e-38, %v1100_v53  ;;  %vm1099_vm0 = vcmp.eq.f32.partialorder %v1098_v54, 8.507059e+37 }
0x1c4f   :  { %v1623_v45 = vpop.eup %1622 }
0x1c50   :  { %v1090_v48 = vmul.f32 %v1623_v45, %v1088_v44  ;;  %vm1095_vm12 = vweird.f32 %v1623_v45 }
0x1c51   :  { %vm1096_vm14 = vmor %vm1094_vm13, %vm1095_vm12  ;;  %vm1326_vm13 = vcmask 1041408  }
0x1c52   :  { %v1091_v49 = vsub.f32 1.0, %v1090_v48 }
0x1c54   :  { %v1092_v51 = vmul.f32 %v1623_v45, %v1091_v49 }
0x1c56   :  { %v1093_v52 = vadd.f32 %v1623_v45, %v1092_v51 }
0x1c58   :  { %v1097_v55 = vsel %vm1096_vm14, %v1623_v45, %v1093_v52  ;;  %vm1327_vm14 = vcmask 1042432  }
0x1c59   :  { %v1102_v58 = vsel %vm1099_vm0, %v1101_v56, %v1097_v55  ;;  %vm1322_vm0 = vcmask 39936  }
0x1c5a   :  { %v1108_v60 = vmul.f32 %v1106_v12, %v1102_v58 }
0x1cb7   :  { %v1111_v57 = vpop.permute.xlu0 %1110 }
0x1cb8   :  { %v1113_v59 = vmul.f32 %v1111_v57, %v1102_v58 }
0x1cba   :  { %1115 = vrot.lane.b32.xlu1 %v1113_v59, %s1787_s6 }
0x1d2c   :  { %v1116_v61 = vpop.permute.xlu1 %1115 }
0x1d2d   :  { %v1118_v62 = vadd.f32 %v1116_v61, %v1108_v60 }
0x1d2f   :  { %1624 = vtanh.f32 %v1118_v62  ;;  %v1171_v30 = vrot.slane %v1118_v62, 2 }
0x1d35   :  { %v1625_v63 = vpop.eup %1624 }
0x1d36   :  { %1121 = vrot.lane.b32.xlu2 %v1625_v63, %s1787_s6 }
0x1d90   :  { %v1122_v0 = vpop.permute.xlu2 %1121 }
0x1d91   :  { %v1124_v1 = vmul.f32 %v1122_v0, %v1102_v58 }
0x1d93   :  { %v1125_v3 = vpack.c.bf16 %v1124_v1, %v1124_v1 }
0x1d95   :  { %v1127_v4 = vrot.slane %v1125_v3, 3 }
0x1d97   :  { %1128 = vrot.lane.b32.xlu0 %v1127_v4, %s1788_s22 }
0x1e09   :  { %v1129_v6 = vpop.permute.xlu0 %1128 }
0x1e0a   :  { %1463 = vmatmul.msk.bf16.vlgmr.msrb.gmra.mxu0 %vm812_vm15, %v1129_v6 }
0x1e87   :  { %v1142_v8 = vpop.f32.mrf.mxu0 }
0x1e88   :  { %v1147_v11 = vrot.slane %v1142_v8, 4 }
0x1e8a   :  { %v1149_v13 = vadd.f32 %v1147_v11, %v2001_v47 }
0x1e8c   :  { %1626 = vtanh.f32 %v1149_v13  ;;  %v1464_v16 = vmul.f32 -1.442695, %v1149_v13 }
0x1e8e   :  { %1628 = vpow2.f32 %v1464_v16 }
0x1e8f   :  { %v1144_v19 = vpop.f32.mrf.mxu0 }
0x1e92   :  { %v1627_v14 = vpop.eup %1626 }
0x1e93   :  { %1175 = vrot.lane.b32.xlu1 %v1627_v14, %s1786_s21 }
0x1e94   :  { %v1629_v17 = vpop.eup %1628 }
0x1e95   :  { %v1153_v18 = vadd.f32 1.0, %v1629_v17 }
0x1e97   :  { %1630 = vrcp.f32 %v1153_v18  ;;  %v1165_v23 = vand.u32 2147483648, %v1153_v18  ;;  %vm1159_vm2 = vweird.f32 %v1153_v18  ;;  %v1163_v25 = vand.u32 2147483647, %v1153_v18 }
0x1e99   :  { %v1166_v27 = vor.u32 1.1754944e-38, %v1165_v23  ;;  %vm1164_vm4 = vcmp.eq.f32.partialorder %v1163_v25, 8.507059e+37 }
0x1e9d   :  { %v1631_v35 = vpop.eup %1630 }
0x1e9e   :  { %v1155_v2 = vmul.f32 %v1631_v35, %v1153_v18  ;;  %vm1160_vm1 = vweird.f32 %v1631_v35 }
0x1e9f   :  { %vm1161_vm3 = vmor %vm1159_vm2, %vm1160_vm1  ;;  %vm1376_vm1 = vcmask 25600  }
0x1ea0   :  { %v1156_v7 = vsub.f32 1.0, %v1155_v2 }
0x1ea2   :  { %v1157_v21 = vmul.f32 %v1631_v35, %v1156_v7 }
0x1ea4   :  { %v1158_v22 = vadd.f32 %v1631_v35, %v1157_v21 }
0x1ea6   :  { %v1162_v26 = vsel %vm1161_vm3, %v1631_v35, %v1158_v22 }
0x1ea7   :  { %v1167_v29 = vsel %vm1164_vm4, %v1166_v27, %v1162_v26 }
0x1ea8   :  { %v1173_v31 = vmul.f32 %v1171_v30, %v1167_v29  ;;  %v1321_v30 = vld [vmem:[%s2077_s9] sm:$0x7] }
0x1f05   :  { %v1176_v28 = vpop.permute.xlu1 %1175 }
0x1f06   :  { %v1178_v50 = vmul.f32 %v1176_v28, %v1167_v29 }
0x1f08   :  { %1180 = vrot.lane.b32.xlu2 %v1178_v50, %s1787_s6 }
0x1f62   :  { %v1181_v9 = vpop.permute.xlu2 %1180 }
0x1f63   :  { %v1183_v39 = vadd.f32 %v1181_v9, %v1173_v31  ;;  %v1485_v31 = vld [vmem:[%s2076_s8] sm:$0xff]  ;;  %v1789_v9 = vmov 65535  }
0x1f64   :  { %1365 = vmatpush.bf16.msra.mxu0 %v1485_v31 }
0x1f65   :  { %1632 = vtanh.f32 %v1183_v39  ;;  %v1236_v57 = vrot.slane %v1183_v39, 2  ;;  %v1328_v39 = vsel %vm1326_vm13, 4294967295, %v1789_v9 }
0x1f6b   :  { %v1633_v10 = vpop.eup %1632 }
0x1f6c   :  { %1186 = vrot.lane.b32.xlu0 %v1633_v10, %s1787_s6  ;;  %v1329_v10 = vsel %vm1327_vm14, %v1328_v39, 0 }
0x1fde   :  { %v1187_v15 = vpop.permute.xlu0 %1186 }
0x1fdf   :  { %v1189_v32 = vmul.f32 %v1187_v15, %v1167_v29  ;;  %v1331_v15 = vand.u32 %v1329_v10, %v1321_v30 }
0x1fe1   :  { %v1190_v33 = vpack.c.bf16 %v1189_v32, %v1189_v32  ;;  %1340 = vmatpush.bf16.msra.mxu3 %v1331_v15  ;;  %v1320_v32 = vld [vmem:[%s2069_s1] sm:$0x1] }
0x1fe3   :  { %v1192_v34 = vrot.slane %v1190_v33, 2 }
0x1fe4   :  { %1469 = vmatmul.msk.bf16.vlgmr.msra.gmra.mxu3 %vm1322_vm0, %v1320_v32 }
0x1fe5   :  { %1193 = vrot.lane.b32.xlu1 %v1192_v34, %s1788_s22 }
0x2057   :  { %v1194_v36 = vpop.permute.xlu1 %1193 }
0x2058   :  { %1465 = vmatmul.msk.bf16.vlgmr.msra.gmra.mxu1 %vm812_vm15, %v1194_v36 }
0x20d5   :  { %v1207_v46 = vpop.f32.mrf.mxu1 }
0x20d6   :  { %v1212_v20 = vrot.slane %v1207_v46, 6  ;;  %v1342_v46 = vpop.f32.mrf.mxu3 }
0x20d8   :  { %v1214_v24 = vadd.f32 %v1212_v20, %v2001_v47 }
0x20da   :  { %1634 = vtanh.f32 %v1214_v24  ;;  %v1466_v40 = vmul.f32 -1.442695, %v1214_v24 }
0x20dc   :  { %1636 = vpow2.f32 %v1466_v40 }
0x20dd   :  { %v1209_v37 = vpop.f32.mrf.mxu1 }
0x20de   :  { %v1344_v24 = vpop.f32.mrf.mxu3  ;;  %v1521_v37 = vld [vmem:[%s2078_s10] ss:$0 sm:$0xff] }
0x20e0   :  { %v1635_v38 = vpop.eup %1634 }
0x20e1   :  { %1240 = vrot.lane.b32.xlu2 %v1635_v38, %s1786_s21 }
0x20e2   :  { %v1637_v41 = vpop.eup %1636 }
0x20e3   :  { %v1218_v42 = vadd.f32 1.0, %v1637_v41 }
0x20e5   :  { %1638 = vrcp.f32 %v1218_v42  ;;  %v1230_v49 = vand.u32 2147483648, %v1218_v42  ;;  %vm1224_vm7 = vweird.f32 %v1218_v42  ;;  %v1228_v51 = vand.u32 2147483647, %v1218_v42 }
0x20e7   :  { %v1231_v53 = vor.u32 1.1754944e-38, %v1230_v49  ;;  %vm1229_vm9 = vcmp.eq.f32.partialorder %v1228_v51, 8.507059e+37 }
0x20eb   :  { %v1639_v5 = vpop.eup %1638 }
0x20ec   :  { %v1220_v43 = vmul.f32 %v1639_v5, %v1218_v42  ;;  %vm1225_vm6 = vweird.f32 %v1639_v5 }
0x20ed   :  { %vm1226_vm8 = vmor %vm1224_vm7, %vm1225_vm6 }
0x20ee   :  { %v1221_v44 = vsub.f32 1.0, %v1220_v43 }
0x20f0   :  { %v1222_v45 = vmul.f32 %v1639_v5, %v1221_v44 }
0x20f2   :  { %v1223_v48 = vadd.f32 %v1639_v5, %v1222_v45 }
0x20f4   :  { %v1227_v52 = vsel %vm1226_vm8, %v1639_v5, %v1223_v48 }
0x20f5   :  { %v1232_v55 = vsel %vm1229_vm9, %v1231_v53, %v1227_v52 }
0x20f6   :  { %v1238_v58 = vmul.f32 %v1236_v57, %v1232_v55 }
0x213b   :  { %v1241_v54 = vpop.permute.xlu2 %1240 }
0x213c   :  { %v1243_v56 = vmul.f32 %v1241_v54, %v1232_v55 }
0x213e   :  { %1245 = vrot.lane.b32.xlu0 %v1243_v56, %s1787_s6 }
0x21b0   :  { %v1246_v59 = vpop.permute.xlu0 %1245 }
0x21b1   :  { %v1248_v12 = vadd.f32 %v1246_v59, %v1238_v58 }
0x21b3   :  { %1640 = vtanh.f32 %v1248_v12  ;;  %v1298_v26 = vrot.slane %v1248_v12, 2 }
0x21b9   :  { %v1641_v60 = vpop.eup %1640 }
0x21ba   :  { %1251 = vrot.lane.b32.xlu1 %v1641_v60, %s1787_s6 }
0x222c   :  { %v1252_v61 = vpop.permute.xlu1 %1251 }
0x222d   :  { %v1254_v62 = vmul.f32 %v1252_v61, %v1232_v55 }
0x222f   :  { %v1255_v63 = vpack.c.bf16 %v1254_v62, %v1254_v62 }
0x2231   :  { %v1257_v0 = vrot.slane %v1255_v63, 1 }
0x2233   :  { %1258 = vrot.lane.b32.xlu2 %v1257_v0, %s1788_s22 }
0x228d   :  { %v1259_v1 = vpop.permute.xlu2 %1258 }
0x228e   :  { %1467 = vmatmul.msk.bf16.vlgmr.msra.gmra.mxu2 %vm812_vm15, %v1259_v1 }
0x2311   :  { %v1272_v3 = vpop.f32.mrf.mxu2 }
0x2312   :  { %v1276_v4 = vadd.f32 %v1272_v3, %v2001_v47 }
0x2314   :  { %1642 = vtanh.f32 %v1276_v4  ;;  %v1468_v11 = vmul.f32 -1.442695, %v1276_v4 }
0x2316   :  { %1644 = vpow2.f32 %v1468_v11 }
0x2319   :  { %v1274_v6 = vpop.f32.mrf.mxu2 }
0x231a   :  { %v1643_v8 = vpop.eup %1642 }
0x231b   :  { %1302 = vrot.lane.b32.xlu0 %v1643_v8, %s1786_s21 }
0x231c   :  { %v1645_v13 = vpop.eup %1644 }
0x231d   :  { %v1280_v19 = vadd.f32 1.0, %v1645_v13 }
0x231f   :  { %1646 = vrcp.f32 %v1280_v19  ;;  %v1292_v2 = vand.u32 2147483648, %v1280_v19  ;;  %vm1286_vm11 = vweird.f32 %v1280_v19  ;;  %v1290_v7 = vand.u32 2147483647, %v1280_v19 }
0x2321   :  { %v1293_v21 = vor.u32 1.1754944e-38, %v1292_v2  ;;  %vm1291_vm12 = vcmp.eq.f32.partialorder %v1290_v7, 8.507059e+37 }
0x2325   :  { %v1647_v14 = vpop.eup %1646 }
0x2326   :  { %v1282_v16 = vmul.f32 %v1647_v14, %v1280_v19  ;;  %vm1287_vm10 = vweird.f32 %v1647_v14 }
0x2327   :  { %vm1288_vm5 = vmor %vm1286_vm11, %vm1287_vm10 }
0x2328   :  { %v1283_v17 = vsub.f32 1.0, %v1282_v16 }
0x232a   :  { %v1284_v18 = vmul.f32 %v1647_v14, %v1283_v17 }
0x232c   :  { %v1285_v35 = vadd.f32 %v1647_v14, %v1284_v18 }
0x232e   :  { %v1289_v47 = vsel %vm1288_vm5, %v1647_v14, %v1285_v35 }
0x232f   :  { %v1294_v23 = vsel %vm1291_vm12, %v1293_v21, %v1289_v47 }
0x2330   :  { %v1300_v27 = vmul.f32 %v1298_v26, %v1294_v23 }
0x238d   :  { %v1303_v22 = vpop.permute.xlu0 %1302 }
0x238e   :  { %v1305_v25 = vmul.f32 %v1303_v22, %v1294_v23 }
0x2390   :  { %1307 = vrot.lane.b32.xlu1 %v1305_v25, %s1787_s6 }
0x2402   :  { %v1308_v28 = vpop.permute.xlu1 %1307 }
0x2403   :  { %v1310_v29 = vadd.f32 %v1308_v28, %v1300_v27 }
0x2405   :  { %1648 = vtanh.f32 %v1310_v29 }
0x240b   :  { %v1649_v50 = vpop.eup %1648 }
0x240c   :  { %1313 = vrot.lane.b32.xlu2 %v1649_v50, %s1787_s6 }
0x2466   :  { %v1314_v33 = vpop.permute.xlu2 %1313 }
0x2467   :  { %v1316_v34 = vmul.f32 %v1314_v33, %v1294_v23 }
0x2469   :  { %v1317_v36 = vpack.c.bf16 %v1316_v34, %v1316_v34 }
0x246b   :  { %1347 = vrot.lane.b32.xlu0 %v1317_v36, %s1788_s22 }
0x24dd   :  { %v1348_v20 = vpop.permute.xlu0 %1347 }
0x24de   :  { %1474 = vmatmul.msk.bf16.vlgmr.msra.gmra.mxu0 %vm812_vm15, %v1348_v20 }
0x255b   :  { %v1367_v38 = vpop.f32.mrf.mxu0 }
0x255c   :  { %v1368_v40 = vadd.f32 %v1367_v38, %v1342_v46 }
0x255e   :  { %v1375_v41 = vadd.f32 %v1521_v37, %v1368_v40 }
0x2560   :  { %1377 = vst.msk [vmem:[#allocation11] sm:$0x3] %vm1376_vm1, %v1375_v41 }
0x2561   :  { %1388 = dma.vmem_to_hbm [thread:$0]  %s1384_s30, 32, %s1386_s12, [#allocation5]  }
0x2563   :  { %v1369_v42 = vpop.f32.mrf.mxu0 }
0x2564   :  { %1776 = dma.done.wait [#allocation5], 32  }
0x2565   :  { %1777 = vsyncadd [#allocation5], 4294967264 }
0x2566   :  { %1393 = vsyncpa [#allocation4], 1 }
0x2567   :  { %1394 = vsyncpa [#allocation7], 1 }
0x2568   :  { %1395 = vsyncpa [#allocation10], 1 }
0x2569   :  { %1396 = vsyncpa [#allocation5], 1 }

</bundles_post_ra>
